<compile_context>
chip_gen: v7x
topology: tpu7x:2x2x1
jax: 0.10.0
libtpu: 0.0.40
codegen_flags: <defaults>
</compile_context>

<pallas_src>
import jax
import jax.numpy as jnp
from jax.experimental import pallas as pl
from jax.experimental.pallas import tpu as pltpu


# ----------------------------------------------------------------------------
# Kernel 1/2: fused  tanh( (patches @ W) * scale + bias )   (conv + BN + tanh)
# ----------------------------------------------------------------------------
def _conv_bn_tanh_kernel(p_ref, w_ref, s_ref, b_ref, o_ref):
    # p_ref: (M, K) bf16,  w_ref: (K, 128) bf16,  s/b: (1, 128) f32,  o: (M, 128) bf16
    acc = jnp.dot(p_ref[...], w_ref[...], preferred_element_type=jnp.float32)
    o_ref[...] = jnp.tanh(acc * s_ref[...] + b_ref[...]).astype(o_ref.dtype)


def conv_bn_tanh(patches, w, s, b):
    """patches: (N, M, K) bf16; w: (K, 128) bf16; s, b: (1, 128) f32 -> (N, M, 128) bf16."""
    N, M, K = patches.shape
    return pl.pallas_call(
        _conv_bn_tanh_kernel,
        out_shape=jax.ShapeDtypeStruct((N, M, 128), jnp.bfloat16),
        grid=(N,),
        in_specs=[
            pl.BlockSpec((None, M, K), lambda n: (n, 0, 0)),   # per-batch activation tile
            pl.BlockSpec((K, 128), lambda n: (0, 0)),          # weights: resident across grid
            pl.BlockSpec((1, 128), lambda n: (0, 0)),
            pl.BlockSpec((1, 128), lambda n: (0, 0)),
        ],
        out_specs=pl.BlockSpec((None, M, 128), lambda n: (n, 0, 0)),
        compiler_params=pltpu.CompilerParams(dimension_semantics=("parallel",)),
    )(patches, w, s, b)


# ----------------------------------------------------------------------------
# Kernel 3: fused  sigmoid( tanh(h @ W1 + b1) @ W2 + b2 )   (linear1+linear2 head)
# ----------------------------------------------------------------------------
def _mlp_head_kernel(h_ref, w1_ref, b1_ref, w2_ref, b2_ref, o_ref):
    t = jnp.tanh(jnp.dot(h_ref[...], w1_ref[...],
                         preferred_element_type=jnp.float32) + b1_ref[...])
    z = jnp.dot(t, w2_ref[...], preferred_element_type=jnp.float32) + b2_ref[...]
    o_ref[...] = 0.5 * jnp.tanh(0.5 * z) + 0.5          # sigmoid, inf-free, EUP path


def mlp_head(h, wl1, bl1, wl2, bl2):
    """h: (N, 3200) bf16 -> (N, 128) f32 (only column 0 is the real output)."""
    N, K = h.shape
    return pl.pallas_call(
        _mlp_head_kernel,
        out_shape=jax.ShapeDtypeStruct((N, 128), jnp.float32),
        grid=(1,),
        in_specs=[
            pl.BlockSpec((N, K), lambda i: (0, 0)),
            pl.BlockSpec((K, 128), lambda i: (0, 0)),
            pl.BlockSpec((1, 128), lambda i: (0, 0)),
            pl.BlockSpec((128, 128), lambda i: (0, 0)),
            pl.BlockSpec((1, 128), lambda i: (0, 0)),
        ],
        out_specs=pl.BlockSpec((N, 128), lambda i: (0, 0)),
        compiler_params=pltpu.CompilerParams(dimension_semantics=("arbitrary",)),
    )(h, wl1, bl1, wl2, bl2)


# ----------------------------------------------------------------------------
# Host-side glue: NHWC im2col (strided slices only, no transposes)
# ----------------------------------------------------------------------------
def im2col_nhwc(x, k, stride):
    """x: (N, H, W, C) -> (N, Ho*Wo, k*k*C); K-order is (kh, kw, ci)."""
    N, H, W, C = x.shape
    Ho = (H - k) // stride + 1
    Wo = (W - k) // stride + 1
    taps = [x[:, i:i + stride * Ho:stride, j:j + stride * Wo:stride, :]
            for i in range(k) for j in range(k)]
    p = jnp.stack(taps, axis=3)                              # (N, Ho, Wo, k*k, C)
    return p.reshape(N, Ho * Wo, k * k * C), Ho, Wo
# TODO(synk): the stride-2 patch gather could be moved fully inside the conv kernels
# (VMEM-resident h1, strided ref loads) to reach a single-launch forward pass.


# ----------------------------------------------------------------------------
# One-time parameter preparation: fold BN, permute to NHWC K-order, pad, cast bf16
# ----------------------------------------------------------------------------
def prepare_inference_params(p, eps=1e-5):
    # conv1 + bn1: K-order (kh, kw) [ci=1], K padded 25->32, Cout padded 64->128
    s1 = p["bn1_g"] / jnp.sqrt(p["bn1_v"] + eps)
    b1 = p["bn1_b"] + (p["conv1_b"] - p["bn1_m"]) * s1
    w1 = p["conv1_w"].reshape(64, 25).T                                    # (25, 64)
    w1 = jnp.zeros((32, 128), jnp.float32).at[:25, :64].set(w1)
    s1p = jnp.zeros((1, 128), jnp.float32).at[0, :64].set(s1)
    b1p = jnp.zeros((1, 128), jnp.float32).at[0, :64].set(b1)              # tanh(0)=0 on pads

    # conv2 + bn2: rows ordered (kh, kw, ci_padded_to_128); padded-ci rows are zero
    s2 = p["bn2_g"] / jnp.sqrt(p["bn2_v"] + eps)
    b2 = p["bn2_b"] + (p["conv2_b"] - p["bn2_m"]) * s2
    w2 = jnp.transpose(p["conv2_w"], (2, 3, 1, 0))                         # (5,5,64,128)
    w2 = jnp.zeros((5, 5, 128, 128), jnp.float32).at[:, :, :64, :].set(w2)
    w2 = w2.reshape(5 * 5 * 128, 128)                                      # (3200, 128)

    # linear1: permute columns from NCHW flatten (c*25 + p) to NHWC flatten (p*128 + c),
    # pad outputs 100 -> 128 (zero cols; matching zero rows in linear2 keep them inert)
    wl1 = p["lin1_w"].reshape(100, 128, 25)                                # [n, c, p]
    wl1 = jnp.transpose(wl1, (2, 1, 0)).reshape(3200, 100)                 # [p*128+c, n]
    wl1 = jnp.zeros((3200, 128), jnp.float32).at[:, :100].set(wl1)
    bl1 = jnp.zeros((1, 128), jnp.float32).at[0, :100].set(p["lin1_b"])

    # linear2: K padded 100 -> 128 (zero rows), output padded 1 -> 128 (col 0 real)
    wl2 = jnp.zeros((128, 128), jnp.float32).at[:100, 0].set(p["lin2_w"][0])
    bl2 = jnp.zeros((1, 128), jnp.float32).at[0, 0].set(p["lin2_b"][0])

    return {
        "w1": w1.astype(jnp.bfloat16), "s1": s1p, "b1": b1p,
        "w2": w2.astype(jnp.bfloat16), "s2": s2.reshape(1, 128), "b2": b2.reshape(1, 128),
        "wl1": wl1.astype(jnp.bfloat16), "bl1": bl1,
        "wl2": wl2, "bl2": bl2,
    }


# ----------------------------------------------------------------------------
# Full forward pass
# ----------------------------------------------------------------------------
def discriminator_forward(x, ip):
    """x: (N, 1, 29, 29) f32 (PyTorch NCHW) -> (N, 1) f32."""
    N = x.shape[0]
    # C == 1, so NCHW -> NHWC is a pure (free) reshape, not a transpose.
    x_nhwc = x.reshape(N, 29, 29, 1).astype(jnp.bfloat16)

    # conv1 + bn1 + tanh (dropout2d = identity in eval)
    p1, _, _ = im2col_nhwc(x_nhwc, k=5, stride=2)                      # (N, 169, 25)
    p1 = jnp.pad(p1, ((0, 0), (0, 0), (0, 7)))                         # K 25 -> 32
    h1 = conv_bn_tanh(p1, ip["w1"], ip["s1"], ip["b1"])                # (N, 169, 128) bf16
    h1 = h1.reshape(N, 13, 13, 128)                                    # free reshape (NHWC)

    # conv2 + bn2 + tanh (dropout2d = identity in eval)
    p2, _, _ = im2col_nhwc(h1, k=5, stride=2)                          # (N, 25, 3200) bf16
    h2 = conv_bn_tanh(p2, ip["w2"], ip["s2"], ip["b2"])                # (N, 25, 128) bf16

    # NHWC flatten (free); linear weights were pre-permuted to this order.
    hf = h2.reshape(N, 25 * 128)                                       # (N, 3200)

    # linear1 + tanh + linear2 + sigmoid, fused
    out = mlp_head(hf, ip["wl1"], ip["bl1"], ip["wl2"], ip["bl2"])     # (N, 128)
    return out[:, :1]                                                  # (N, 1)


# ----------------------------------------------------------------------------
# Pure-JAX f32 reference (PyTorch-equivalent eval forward) for a sanity check
# ----------------------------------------------------------------------------
def reference_forward(x, params):
    def conv(x, w, b, stride):
        y = jax.lax.conv_general_dilated(
            x, w, window_strides=(stride, stride), padding="VALID",
            dimension_numbers=("NCHW", "OIHW", "NCHW"))
        return y + b[None, :, None, None]

    def bn(x, g, b, m, v, eps=1e-5):
        return (x - m[None, :, None, None]) / jnp.sqrt(v[None, :, None, None] + eps) \
               * g[None, :, None, None] + b[None, :, None, None]

    h = jnp.tanh(bn(conv(x, params["conv1_w"], params["conv1_b"], 2),
                    params["bn1_g"], params["bn1_b"], params["bn1_m"], params["bn1_v"]))
    h = jnp.tanh(bn(conv(h, params["conv2_w"], params["conv2_b"], 2),
                    params["bn2_g"], params["bn2_b"], params["bn2_m"], params["bn2_v"]))
    h = h.reshape(h.shape[0], -1)
    h = jnp.tanh(h @ params["lin1_w"].T + params["lin1_b"])
    h = h @ params["lin2_w"].T + params["lin2_b"]
    return jax.nn.sigmoid(h)


# ----------------------------------------------------------------------------
# Deterministic synthetic parameters (not a checkpoint load)
# ----------------------------------------------------------------------------
def init_params(key):
    ks = jax.random.split(key, 16)
    u = lambda k, shape, s=0.1: jax.random.uniform(k, shape, jnp.float32, -s, s)
    return {
        "conv1_w": u(ks[0], (64, 1, 5, 5)),
        "conv1_b": u(ks[1], (64,)),
        "bn1_g": 1.0 + u(ks[2], (64,)),
        "bn1_b": u(ks[3], (64,)),
        "bn1_m": u(ks[4], (64,)),
        "bn1_v": jax.random.uniform(ks[5], (64,), jnp.float32, 0.5, 1.5),
        "conv2_w": u(ks[6], (128, 64, 5, 5), 0.02),
        "conv2_b": u(ks[7], (128,)),
        "bn2_g": 1.0 + u(ks[8], (128,)),
        "bn2_b": u(ks[9], (128,)),
        "bn2_m": u(ks[10], (128,)),
        "bn2_v": jax.random.uniform(ks[11], (128,), jnp.float32, 0.5, 1.5),
        "lin1_w": u(ks[12], (100, 128 * 5 * 5), 0.02),
        "lin1_b": u(ks[13], (100,)),
        "lin2_w": u(ks[14], (1, 100)),
        "lin2_b": u(ks[15], (1,)),
    }


if __name__ == "__main__":
    key = jax.random.PRNGKey(0)
    pkey, xkey = jax.random.split(key)
    params = init_params(pkey)
    ip = prepare_inference_params(params)

    # batch=2, channels=1, spatial=29x29 (-> 13x13 -> 5x5, matching 128*5*5 Linear)
    x = jax.random.normal(xkey, (2, 1, 29, 29), jnp.float32)

    fwd = jax.jit(discriminator_forward)
    out = jax.block_until_ready(fwd(x, ip))
    ref = jax.block_until_ready(reference_forward(x, params))

    assert out.shape == (2, 1)
    # bf16 MXU operands with f32 accumulation: expected |err| ~1e-3 on a sigmoid output.
    assert jnp.allclose(out, ref, atol=1e-2, rtol=1e-2), (out, ref)
    print("KERNEL_OK")
</pallas_src>

<mosaic_0001>
module attributes {stable_mosaic.version = 11 : i64} {
  func.func @_conv_bn_tanh_kernel(%arg0: i32, %arg1: memref<1x169x32xbf16, #tpu.memory_space<vmem>>, %arg2: memref<32x128xbf16, #tpu.memory_space<vmem>>, %arg3: memref<1x128xf32, #tpu.memory_space<vmem>>, %arg4: memref<1x128xf32, #tpu.memory_space<vmem>>, %arg5: memref<1x169x128xbf16, #tpu.memory_space<vmem>>) attributes {dimension_semantics = [#tpu.dimension_semantics<parallel>], iteration_bounds = array<i64: 2>, scalar_prefetch = 0 : i64, scratch_operands = 0 : i64, tpu.core_type = #tpu.core_type<tc>, window_params = [{transform_indices = @transform_0, window_bounds = array<i64: 1, 169, 32>}, {pipeline_mode = #tpu.pipeline_mode<synchronous>, transform_indices = @transform_1, window_bounds = array<i64: 32, 128>}, {pipeline_mode = #tpu.pipeline_mode<synchronous>, transform_indices = @transform_2, window_bounds = array<i64: 1, 128>}, {pipeline_mode = #tpu.pipeline_mode<synchronous>, transform_indices = @transform_3, window_bounds = array<i64: 1, 128>}, {transform_indices = @transform_4, window_bounds = array<i64: 1, 169, 128>}]} {
    %c0 = arith.constant 0 : index
    %c0_0 = arith.constant 0 : index
    %c0_1 = arith.constant 0 : index
    %0 = vector.load %arg1[%c0, %c0_0, %c0_1] : memref<1x169x32xbf16, #tpu.memory_space<vmem>>, vector<1x169x32xbf16>
    %1 = vector.shape_cast %0 : vector<1x169x32xbf16> to vector<169x32xbf16>
    %c0_2 = arith.constant 0 : index
    %c0_3 = arith.constant 0 : index
    %2 = vector.load %arg2[%c0_2, %c0_3] : memref<32x128xbf16, #tpu.memory_space<vmem>>, vector<32x128xbf16>
    %cst = arith.constant dense<0.000000e+00> : vector<169x128xf32>
    %3 = tpu.matmul %1, %2, %cst {dimension_numbers = #tpu.dot_dimension_numbers<[1], [0], [0], [1], [0, 0, 1, 1], [], []>} : vector<169x32xbf16>, vector<32x128xbf16>, vector<169x128xf32> -> vector<169x128xf32>
    %c0_4 = arith.constant 0 : index
    %c0_5 = arith.constant 0 : index
    %4 = vector.load %arg3[%c0_4, %c0_5] : memref<1x128xf32, #tpu.memory_space<vmem>>, vector<1x128xf32>
    %5 = vector.broadcast %4 : vector<1x128xf32> to vector<169x128xf32>
    %6 = arith.mulf %3, %5 : vector<169x128xf32>
    %c0_6 = arith.constant 0 : index
    %c0_7 = arith.constant 0 : index
    %7 = vector.load %arg4[%c0_6, %c0_7] : memref<1x128xf32, #tpu.memory_space<vmem>>, vector<1x128xf32>
    %8 = vector.broadcast %7 : vector<1x128xf32> to vector<169x128xf32>
    %9 = arith.addf %6, %8 : vector<169x128xf32>
    %10 = math.tanh %9 : vector<169x128xf32>
    %11 = arith.truncf %10 : vector<169x128xf32> to vector<169x128xbf16>
    %c0_8 = arith.constant 0 : index
    %c0_9 = arith.constant 0 : index
    %c0_10 = arith.constant 0 : index
    %12 = vector.load %arg5[%c0_8, %c0_9, %c0_10] : memref<1x169x128xbf16, #tpu.memory_space<vmem>>, vector<1x169x128xbf16>
    %13 = vector.shape_cast %12 : vector<1x169x128xbf16> to vector<169x128xbf16>
    %14 = vector.shape_cast %11 : vector<169x128xbf16> to vector<1x169x128xbf16>
    tpu.vector_store %arg5[%c0_8, %c0_9, %c0_10], %14 {strides = array<i32>} : memref<1x169x128xbf16, #tpu.memory_space<vmem>>, vector<1x169x128xbf16>,
    return
  }
  func.func @transform_0(%arg0: i32) -> (i32, i32, i32) {
    %c0_i32 = arith.constant 0 : i32
    %c0_i32_0 = arith.constant 0 : i32
    %c0_i32_1 = arith.constant 0 : i32
    return %arg0, %c0_i32, %c0_i32_0 : i32, i32, i32
  }
  func.func @transform_1(%arg0: i32) -> (i32, i32) {
    %c0_i32 = arith.constant 0 : i32
    %c0_i32_0 = arith.constant 0 : i32
    %c0_i32_1 = arith.constant 0 : i32
    return %c0_i32, %c0_i32_0 : i32, i32
  }
  func.func @transform_2(%arg0: i32) -> (i32, i32) {
    %c0_i32 = arith.constant 0 : i32
    %c0_i32_0 = arith.constant 0 : i32
    %c0_i32_1 = arith.constant 0 : i32
    return %c0_i32, %c0_i32_0 : i32, i32
  }
  func.func @transform_3(%arg0: i32) -> (i32, i32) {
    %c0_i32 = arith.constant 0 : i32
    %c0_i32_0 = arith.constant 0 : i32
    %c0_i32_1 = arith.constant 0 : i32
    return %c0_i32, %c0_i32_0 : i32, i32
  }
  func.func @transform_4(%arg0: i32) -> (i32, i32, i32) {
    %c0_i32 = arith.constant 0 : i32
    %c0_i32_0 = arith.constant 0 : i32
    %c0_i32_1 = arith.constant 0 : i32
    return %arg0, %c0_i32, %c0_i32_0 : i32, i32, i32
  }
}

module attributes {stable_mosaic.version = 11 : i64} {
  func.func @_conv_bn_tanh_kernel(%arg0: i32, %arg1: memref<1x25x3200xbf16, #tpu.memory_space<vmem>>, %arg2: memref<3200x128xbf16, #tpu.memory_space<vmem>>, %arg3: memref<1x128xf32, #tpu.memory_space<vmem>>, %arg4: memref<1x128xf32, #tpu.memory_space<vmem>>, %arg5: memref<1x25x128xbf16, #tpu.memory_space<vmem>>) attributes {dimension_semantics = [#tpu.dimension_semantics<parallel>], iteration_bounds = array<i64: 2>, scalar_prefetch = 0 : i64, scratch_operands = 0 : i64, tpu.core_type = #tpu.core_type<tc>, window_params = [{transform_indices = @transform_0, window_bounds = array<i64: 1, 25, 3200>}, {pipeline_mode = #tpu.pipeline_mode<synchronous>, transform_indices = @transform_1, window_bounds = array<i64: 3200, 128>}, {pipeline_mode = #tpu.pipeline_mode<synchronous>, transform_indices = @transform_2, window_bounds = array<i64: 1, 128>}, {pipeline_mode = #tpu.pipeline_mode<synchronous>, transform_indices = @transform_3, window_bounds = array<i64: 1, 128>}, {transform_indices = @transform_4, window_bounds = array<i64: 1, 25, 128>}]} {
    %c0 = arith.constant 0 : index
    %c0_0 = arith.constant 0 : index
    %c0_1 = arith.constant 0 : index
    %0 = vector.load %arg1[%c0, %c0_0, %c0_1] : memref<1x25x3200xbf16, #tpu.memory_space<vmem>>, vector<1x25x3200xbf16>
    %1 = vector.shape_cast %0 : vector<1x25x3200xbf16> to vector<25x3200xbf16>
    %c0_2 = arith.constant 0 : index
    %c0_3 = arith.constant 0 : index
    %2 = vector.load %arg2[%c0_2, %c0_3] : memref<3200x128xbf16, #tpu.memory_space<vmem>>, vector<3200x128xbf16>
    %cst = arith.constant dense<0.000000e+00> : vector<25x128xf32>
    %3 = tpu.matmul %1, %2, %cst {dimension_numbers = #tpu.dot_dimension_numbers<[1], [0], [0], [1], [0, 0, 1, 1], [], []>} : vector<25x3200xbf16>, vector<3200x128xbf16>, vector<25x128xf32> -> vector<25x128xf32>
    %c0_4 = arith.constant 0 : index
    %c0_5 = arith.constant 0 : index
    %4 = vector.load %arg3[%c0_4, %c0_5] : memref<1x128xf32, #tpu.memory_space<vmem>>, vector<1x128xf32>
    %5 = vector.broadcast %4 : vector<1x128xf32> to vector<25x128xf32>
    %6 = arith.mulf %3, %5 : vector<25x128xf32>
    %c0_6 = arith.constant 0 : index
    %c0_7 = arith.constant 0 : index
    %7 = vector.load %arg4[%c0_6, %c0_7] : memref<1x128xf32, #tpu.memory_space<vmem>>, vector<1x128xf32>
    %8 = vector.broadcast %7 : vector<1x128xf32> to vector<25x128xf32>
    %9 = arith.addf %6, %8 : vector<25x128xf32>
    %10 = math.tanh %9 : vector<25x128xf32>
    %11 = arith.truncf %10 : vector<25x128xf32> to vector<25x128xbf16>
    %c0_8 = arith.constant 0 : index
    %c0_9 = arith.constant 0 : index
    %c0_10 = arith.constant 0 : index
    %12 = vector.load %arg5[%c0_8, %c0_9, %c0_10] : memref<1x25x128xbf16, #tpu.memory_space<vmem>>, vector<1x25x128xbf16>
    %13 = vector.shape_cast %12 : vector<1x25x128xbf16> to vector<25x128xbf16>
    %14 = vector.shape_cast %11 : vector<25x128xbf16> to vector<1x25x128xbf16>
    tpu.vector_store %arg5[%c0_8, %c0_9, %c0_10], %14 {strides = array<i32>} : memref<1x25x128xbf16, #tpu.memory_space<vmem>>, vector<1x25x128xbf16>,
    return
  }
  func.func @transform_0(%arg0: i32) -> (i32, i32, i32) {
    %c0_i32 = arith.constant 0 : i32
    %c0_i32_0 = arith.constant 0 : i32
    %c0_i32_1 = arith.constant 0 : i32
    return %arg0, %c0_i32, %c0_i32_0 : i32, i32, i32
  }
  func.func @transform_1(%arg0: i32) -> (i32, i32) {
    %c0_i32 = arith.constant 0 : i32
    %c0_i32_0 = arith.constant 0 : i32
    %c0_i32_1 = arith.constant 0 : i32
    return %c0_i32, %c0_i32_0 : i32, i32
  }
  func.func @transform_2(%arg0: i32) -> (i32, i32) {
    %c0_i32 = arith.constant 0 : i32
    %c0_i32_0 = arith.constant 0 : i32
    %c0_i32_1 = arith.constant 0 : i32
    return %c0_i32, %c0_i32_0 : i32, i32
  }
  func.func @transform_3(%arg0: i32) -> (i32, i32) {
    %c0_i32 = arith.constant 0 : i32
    %c0_i32_0 = arith.constant 0 : i32
    %c0_i32_1 = arith.constant 0 : i32
    return %c0_i32, %c0_i32_0 : i32, i32
  }
  func.func @transform_4(%arg0: i32) -> (i32, i32, i32) {
    %c0_i32 = arith.constant 0 : i32
    %c0_i32_0 = arith.constant 0 : i32
    %c0_i32_1 = arith.constant 0 : i32
    return %arg0, %c0_i32, %c0_i32_0 : i32, i32, i32
  }
}

module attributes {stable_mosaic.version = 11 : i64} {
  func.func @_mlp_head_kernel(%arg0: i32, %arg1: memref<2x3200xbf16, #tpu.memory_space<vmem>>, %arg2: memref<3200x128xbf16, #tpu.memory_space<vmem>>, %arg3: memref<1x128xf32, #tpu.memory_space<vmem>>, %arg4: memref<128x128xf32, #tpu.memory_space<vmem>>, %arg5: memref<1x128xf32, #tpu.memory_space<vmem>>, %arg6: memref<2x128xf32, #tpu.memory_space<vmem>>) attributes {dimension_semantics = [#tpu.dimension_semantics<arbitrary>], iteration_bounds = array<i64: 1>, scalar_prefetch = 0 : i64, scratch_operands = 0 : i64, tpu.core_type = #tpu.core_type<tc>, window_params = [{pipeline_mode = #tpu.pipeline_mode<synchronous>, transform_indices = @transform_0, window_bounds = array<i64: 2, 3200>}, {pipeline_mode = #tpu.pipeline_mode<synchronous>, transform_indices = @transform_1, window_bounds = array<i64: 3200, 128>}, {pipeline_mode = #tpu.pipeline_mode<synchronous>, transform_indices = @transform_2, window_bounds = array<i64: 1, 128>}, {pipeline_mode = #tpu.pipeline_mode<synchronous>, transform_indices = @transform_3, window_bounds = array<i64: 128, 128>}, {pipeline_mode = #tpu.pipeline_mode<synchronous>, transform_indices = @transform_4, window_bounds = array<i64: 1, 128>}, {pipeline_mode = #tpu.pipeline_mode<synchronous>, transform_indices = @transform_5, window_bounds = array<i64: 2, 128>}]} {
    %c0 = arith.constant 0 : index
    %c0_0 = arith.constant 0 : index
    %0 = vector.load %arg1[%c0, %c0_0] : memref<2x3200xbf16, #tpu.memory_space<vmem>>, vector<2x3200xbf16>
    %c0_1 = arith.constant 0 : index
    %c0_2 = arith.constant 0 : index
    %1 = vector.load %arg2[%c0_1, %c0_2] : memref<3200x128xbf16, #tpu.memory_space<vmem>>, vector<3200x128xbf16>
    %cst = arith.constant dense<0.000000e+00> : vector<2x128xf32>
    %2 = tpu.matmul %0, %1, %cst {dimension_numbers = #tpu.dot_dimension_numbers<[1], [0], [0], [1], [0, 0, 1, 1], [], []>} : vector<2x3200xbf16>, vector<3200x128xbf16>, vector<2x128xf32> -> vector<2x128xf32>
    %c0_3 = arith.constant 0 : index
    %c0_4 = arith.constant 0 : index
    %3 = vector.load %arg3[%c0_3, %c0_4] : memref<1x128xf32, #tpu.memory_space<vmem>>, vector<1x128xf32>
    %4 = vector.broadcast %3 : vector<1x128xf32> to vector<2x128xf32>
    %5 = arith.addf %2, %4 : vector<2x128xf32>
    %6 = math.tanh %5 : vector<2x128xf32>
    %c0_5 = arith.constant 0 : index
    %c0_6 = arith.constant 0 : index
    %7 = vector.load %arg4[%c0_5, %c0_6] : memref<128x128xf32, #tpu.memory_space<vmem>>, vector<128x128xf32>
    %cst_7 = arith.constant dense<0.000000e+00> : vector<2x128xf32>
    %8 = tpu.matmul %6, %7, %cst_7 {dimension_numbers = #tpu.dot_dimension_numbers<[1], [0], [0], [1], [0, 0, 1, 1], [], []>} : vector<2x128xf32>, vector<128x128xf32>, vector<2x128xf32> -> vector<2x128xf32>
    %c0_8 = arith.constant 0 : index
    %c0_9 = arith.constant 0 : index
    %9 = vector.load %arg5[%c0_8, %c0_9] : memref<1x128xf32, #tpu.memory_space<vmem>>, vector<1x128xf32>
    %10 = vector.broadcast %9 : vector<1x128xf32> to vector<2x128xf32>
    %11 = arith.addf %8, %10 : vector<2x128xf32>
    %cst_10 = arith.constant 5.000000e-01 : f32
    %12 = vector.broadcast %cst_10 : f32 to vector<2x128xf32>
    %13 = arith.mulf %12, %11 : vector<2x128xf32>
    %14 = math.tanh %13 : vector<2x128xf32>
    %cst_11 = arith.constant 5.000000e-01 : f32
    %15 = vector.broadcast %cst_11 : f32 to vector<2x128xf32>
    %16 = arith.mulf %15, %14 : vector<2x128xf32>
    %cst_12 = arith.constant 5.000000e-01 : f32
    %17 = vector.broadcast %cst_12 : f32 to vector<2x128xf32>
    %18 = arith.addf %16, %17 : vector<2x128xf32>
    %c0_13 = arith.constant 0 : index
    %c0_14 = arith.constant 0 : index
    %19 = vector.load %arg6[%c0_13, %c0_14] : memref<2x128xf32, #tpu.memory_space<vmem>>, vector<2x128xf32>
    tpu.vector_store %arg6[%c0_13, %c0_14], %18 {strides = array<i32>} : memref<2x128xf32, #tpu.memory_space<vmem>>, vector<2x128xf32>,
    return
  }
  func.func @transform_0(%arg0: i32) -> (i32, i32) {
    %c0_i32 = arith.constant 0 : i32
    %c0_i32_0 = arith.constant 0 : i32
    %c0_i32_1 = arith.constant 0 : i32
    return %c0_i32, %c0_i32_0 : i32, i32
  }
  func.func @transform_1(%arg0: i32) -> (i32, i32) {
    %c0_i32 = arith.constant 0 : i32
    %c0_i32_0 = arith.constant 0 : i32
    %c0_i32_1 = arith.constant 0 : i32
    return %c0_i32, %c0_i32_0 : i32, i32
  }
  func.func @transform_2(%arg0: i32) -> (i32, i32) {
    %c0_i32 = arith.constant 0 : i32
    %c0_i32_0 = arith.constant 0 : i32
    %c0_i32_1 = arith.constant 0 : i32
    return %c0_i32, %c0_i32_0 : i32, i32
  }
  func.func @transform_3(%arg0: i32) -> (i32, i32) {
    %c0_i32 = arith.constant 0 : i32
    %c0_i32_0 = arith.constant 0 : i32
    %c0_i32_1 = arith.constant 0 : i32
    return %c0_i32, %c0_i32_0 : i32, i32
  }
  func.func @transform_4(%arg0: i32) -> (i32, i32) {
    %c0_i32 = arith.constant 0 : i32
    %c0_i32_0 = arith.constant 0 : i32
    %c0_i32_1 = arith.constant 0 : i32
    return %c0_i32, %c0_i32_0 : i32, i32
  }
  func.func @transform_5(%arg0: i32) -> (i32, i32) {
    %c0_i32 = arith.constant 0 : i32
    %c0_i32_0 = arith.constant 0 : i32
    %c0_i32_1 = arith.constant 0 : i32
    return %c0_i32, %c0_i32_0 : i32, i32
  }
}

</mosaic_0001>

<bundles_post_ra>
// kernel: discriminator_forward.3
= control target key start
LH: loop header
LB: loop body
LE: loop exit
PB: predicated region body
PF: predicated region fallthrough
CT: control target
= control target key end

     0   :  { %s1003_s15 = smov 0   ;;  %s1137_s0 = inlined_call_operand.vmem [shape: bf16[2,169,32], index: 0, kind: input, shape index: {}]   ;;  %s1138_s1 = inlined_call_operand.vmem [shape: bf16[32,128], index: 1, kind: input, shape index: {}]   ;;  %s1139_s2 = inlined_call_operand.vmem [shape: f32[1,128], index: 2, kind: input, shape index: {}]   ;;  %s1140_s3 = inlined_call_operand.vmem [shape: f32[1,128], index: 3, kind: input, shape index: {}]   ;;  %s1141_s4 = inlined_call_operand.vmem [shape: bf16[2,169,128], index: 4, kind: output, shape index: {}]  }
   0x1 LB: > { %s697_s16 = sadd.s32 4294967295, %s974_s15   ;;  %p701_p0 = scmp.ge.s32.totalorder %s974_s15, 1  ;;  %s974_s15 = sphi %s1003_s15, %s14_s15  }
   0x2   : > { %p162_p1 = scmp.lt.s32.totalorder %s974_s15, 3 }
   0x4   : > { %p163_p2 = pnand %p701_p0, %p162_p1 }
   0x5   : > { %v911_v0 = vld [vmem:[%s1138_s1] sm:$0xff] (!%p163_p2)   ;;  %v976_v1 = vmov (!%p163_p2), 0.0   ;;  %v912_v2 = vld [vmem:[%s1138_s1 + $0x8] sm:$0xff] (!%p163_p2)   ;;  %p188_p3 = scmp.lt.s32.totalorder (!%p163_p2), %s697_s16, 1  ;;  %vm977_vm0 = vmmov (!%p163_p2), 0   ;;  %vm292_vm1 = vcmask (!%p163_p2), 261120  }
   0x6   : > { %166 = sbr.rel (%p163_p2) target bundleno = 290 (0x122), region = 36  ;;  %848 = vmatprep.subr.bf16.mxu0 (!%p163_p2), %v976_v1  ;;  %896 = vmatprep.subr.bf16.mxu1 (!%p163_p2), %v976_v1  ;;  %v1063_v14 = vld [vmem:[%s1139_s2] ss:$0 sm:$0xff] (!%p163_p2)  ;;  %vm636_vm2 = vcmask (!%p163_p2), 1040384   ;;  %vm637_vm3 = vsmask.f32 (!%p163_p2), 256 }
   0x7   : > { %849 = vmatpush3.bf16.msra.mxu0 (!%p163_p2), %v911_v0  ;;  %898 = vmatpush3.bf16.msra.mxu1 (!%p163_p2), %v911_v0  ;;  %v1068_v16 = vld [vmem:[%s1140_s3] ss:$0 sm:$0xff] (!%p163_p2)  ;;  %vm638_vm4 = vmand (!%p163_p2), %vm636_vm2, %vm637_vm3 }
   0x8   : > { %850 = vmatprep.subr.bf16.mxu0 (!%p163_p2), %v976_v1  ;;  %852 = vmatprep.mubr.msk.bf16.mxu0 (!%p163_p2), %vm977_vm0, %v976_v1 }
   0x9   : > { %897 = vmatprep.subr.bf16.mxu1 (!%p163_p2), %v976_v1  ;;  %876 = vmatprep.mubr.msk.bf16.mxu1 (!%p163_p2), %vm977_vm0, %v976_v1 }
   0xb   : > { %851 = vmatpush3.bf16.msra.mxu0 (!%p163_p2), %v912_v2  ;;  %899 = vmatpush3.bf16.msra.mxu1 (!%p163_p2), %v912_v2 }
   0xd   : > { %s1143_s16 = smov (!%p188_p3, %s697_s16), 1 }
   0xe   : > { %s900_s21 = smul.u32 88, %s1143_s16 }
  0x10   : > { %s1027_s24 = scalar_lea.vmem %s1137_s0, %s900_s21  ;;  %s1091_s5 = scalar_lea.vmem %s1141_s4, %s900_s21 }
  0x11   : > { %v913_v3 = vld [vmem:[%s1027_s24] sm:$0xff]   ;;  %v914_v4 = vld [vmem:[%s1027_s24 + $0x30] sm:$0xff]   ;;  %v915_v5 = vld [vmem:[%s1027_s24 + $0x8] sm:$0xff]  }
  0x12   : > { %853 = vmatmul.mubr.msk.bf16.vlgmr.msra.gmra.mrb[0].mxu0 %vm292_vm1, %v913_v3  ;;  %877 = vmatmul.mubr.msk.bf16.vlgmr.msra.gmra.mrb[0].mxu1 %vm292_vm1, %v914_v4  ;;  %v916_v6 = vld [vmem:[%s1027_s24 + $0x38] sm:$0xff]   ;;  %v917_v7 = vld [vmem:[%s1027_s24 + $0x10] sm:$0xff]   ;;  %v918_v8 = vld [vmem:[%s1027_s24 + $0x40] sm:$0xff]  }
  0x13   : > { %856 = vmatprep.mubr.msk.bf16.mxu0 %vm977_vm0, %v976_v1  ;;  %880 = vmatprep.mubr.msk.bf16.mxu1 %vm977_vm0, %v976_v1  ;;  %v919_v9 = vld [vmem:[%s1027_s24 + $0x18] sm:$0xff]   ;;  %v920_v10 = vld [vmem:[%s1027_s24 + $0x48] sm:$0xff]   ;;  %v921_v11 = vld [vmem:[%s1027_s24 + $0x20] sm:$0xff]  }
  0x14   : > { %v922_v12 = vld [vmem:[%s1027_s24 + $0x50] sm:$0x1f]   ;;  %v923_v13 = vld [vmem:[%s1027_s24 + $0x28] sm:$0xff]  }
  0x1a   : > { %857 = vmatmul.mubr.msk.bf16.gmra.mrb[4].mxu0 %vm292_vm1, %v915_v5  ;;  %881 = vmatmul.mubr.msk.bf16.gmra.mrb[4].mxu1 %vm292_vm1, %v916_v6 }
  0x1b   : > { %860 = vmatprep.mubr.msk.bf16.mxu0 %vm977_vm0, %v976_v1  ;;  %884 = vmatprep.mubr.msk.bf16.mxu1 %vm977_vm0, %v976_v1 }
  0x22   : > { %861 = vmatmul.mubr.msk.bf16.gmra.mrb[8].mxu0 %vm292_vm1, %v917_v7  ;;  %885 = vmatmul.mubr.msk.bf16.gmra.mrb[8].mxu1 %vm292_vm1, %v918_v8 }
  0x23   : > { %864 = vmatprep.mubr.msk.bf16.mxu0 %vm977_vm0, %v976_v1  ;;  %888 = vmatprep.mubr.msk.bf16.mxu1 %vm977_vm0, %v976_v1 }
  0x2a   : > { %865 = vmatmul.mubr.msk.bf16.gmra.mrb[12].mxu0 %vm292_vm1, %v919_v9  ;;  %889 = vmatmul.mubr.msk.bf16.gmra.mrb[12].mxu1 %vm292_vm1, %v920_v10 }
  0x2b   : > { %868 = vmatprep.mubr.msk.bf16.mxu0 %vm977_vm0, %v976_v1  ;;  %892 = vmatprep.mubr.msk.bf16.mxu1 %vm977_vm0, %v976_v1 }
  0x32   : > { %869 = vmatmul.mubr.msk.bf16.gmra.mrb[16].mxu0 %vm292_vm1, %v921_v11  ;;  %893 = vmatmul.mubr.msk.bf16.gmra.mrb[16].mxu1 %vm292_vm1, %v922_v12 }
  0x33   : > { %872 = vmatprep.mubr.msk.bf16.mxu0 %vm977_vm0, %v976_v1 }
  0x3a   : > { %873 = vmatmul.mubr.msk.bf16.gmra.mrb[20].mxu0 %vm292_vm1, %v923_v13 }
  0xe5   : > { %v360_v15 = vpop.f32.mrb[0].mxu0  ;;  %v408_v19 = vpop.f32.mrb[0].mxu1 }
  0xe6   : > { %v454_v17 = vmul.f32 %v1063_v14, %v360_v15  ;;  %v854_v18 = vpop.f32.mrb[1].mxu0  ;;  %v466_v21 = vmul.f32 %v1063_v14, %v408_v19  ;;  %v878_v22 = vpop.f32.mrb[1].mxu1 }
  0xe7   : > { %v363_v20 = vpop.f32.mrb[2].mxu0  ;;  %v411_v26 = vpop.f32.mrb[2].mxu1 }
  0xe8   : > { %v483_v23 = vadd.f32 %v1068_v16, %v454_v17  ;;  %v455_v24 = vmul.f32 %v1063_v14, %v363_v20  ;;  %v855_v25 = vpop.f32.mrb[3].mxu0  ;;  %v495_v27 = vadd.f32 %v1068_v16, %v466_v21  ;;  %v467_v28 = vmul.f32 %v1063_v14, %v411_v26  ;;  %v879_v29 = vpop.f32.mrb[3].mxu1 }
  0xea   : > { %924 = vtanh.f32 %v483_v23  ;;  %v484_v30 = vadd.f32 %v1068_v16, %v455_v24  ;;  %v496_v31 = vadd.f32 %v1068_v16, %v467_v28 }
  0xeb   : > { %926 = vtanh.f32 %v495_v27 }
  0xec   : > { %928 = vtanh.f32 %v484_v30 }
  0xed   : > { %930 = vtanh.f32 %v496_v31  ;;  %v368_v32 = vpop.f32.mrb[4].mxu0  ;;  %v416_v35 = vpop.f32.mrb[4].mxu1 }
  0xee   : > { %v456_v33 = vmul.f32 %v1063_v14, %v368_v32  ;;  %v858_v34 = vpop.f32.mrb[5].mxu0  ;;  %v468_v37 = vmul.f32 %v1063_v14, %v416_v35  ;;  %v882_v38 = vpop.f32.mrb[5].mxu1 }
  0xef   : > { %v371_v36 = vpop.f32.mrb[6].mxu0  ;;  %v419_v42 = vpop.f32.mrb[6].mxu1 }
  0xf0   : > { %v485_v39 = vadd.f32 %v1068_v16, %v456_v33  ;;  %v457_v40 = vmul.f32 %v1063_v14, %v371_v36  ;;  %v859_v41 = vpop.f32.mrb[7].mxu0  ;;  %v497_v43 = vadd.f32 %v1068_v16, %v468_v37  ;;  %v469_v44 = vmul.f32 %v1063_v14, %v419_v42  ;;  %v883_v45 = vpop.f32.mrb[7].mxu1 }
  0xf2   : > { %932 = vtanh.f32 %v485_v39  ;;  %v486_v46 = vadd.f32 %v1068_v16, %v457_v40  ;;  %v498_v47 = vadd.f32 %v1068_v16, %v469_v44 }
  0xf3   : > { %934 = vtanh.f32 %v497_v43 }
  0xf4   : > { %v925_v48 = vpop.eup %924  ;;  %936 = vtanh.f32 %v486_v46 }
  0xf5   : > { %v927_v49 = vpop.eup %926  ;;  %938 = vtanh.f32 %v498_v47  ;;  %v376_v50 = vpop.f32.mrb[8].mxu0 }
  0xf6   : > { %v929_v51 = vpop.eup %928  ;;  %v458_v52 = vmul.f32 %v1063_v14, %v376_v50  ;;  %v862_v53 = vpop.f32.mrb[9].mxu0 }
  0xf7   : > { %v424_v54 = vpop.f32.mrb[8].mxu1  ;;  %v931_v55 = vpop.eup %930  ;;  %v779_v56 = vpack.c.bf16 %v929_v51, %v925_v48 }
  0xf8   : > { %v379_v57 = vpop.f32.mrb[10].mxu0  ;;  %v470_v58 = vmul.f32 %v1063_v14, %v424_v54  ;;  %v886_v59 = vpop.f32.mrb[9].mxu1  ;;  %v809_v60 = vpack.c.bf16 %v931_v55, %v927_v49  ;;  %v487_v61 = vadd.f32 %v1068_v16, %v458_v52 }
  0xf9   : > { %v459_v62 = vmul.f32 %v1063_v14, %v379_v57  ;;  %v863_v63 = vpop.f32.mrb[11].mxu0  ;;  %v427_v0 = vpop.f32.mrb[10].mxu1  ;;  %780 = vst [vmem:[%s1091_s5] sm:$0xff] %v779_v56  }
  0xfa   : > { %v499_v1 = vadd.f32 %v1068_v16, %v470_v58  ;;  %v471_v2 = vmul.f32 %v1063_v14, %v427_v0  ;;  %v887_v3 = vpop.f32.mrb[11].mxu1  ;;  %831 = vst [vmem:[%s1091_s5 + $0x30] sm:$0xff] %v809_v60   ;;  %940 = vtanh.f32 %v487_v61 }
  0xfb   : > { %v488_v4 = vadd.f32 %v1068_v16, %v459_v62 }
  0xfc   : > { %942 = vtanh.f32 %v499_v1  ;;  %v500_v5 = vadd.f32 %v1068_v16, %v471_v2  ;;  %v933_v6 = vpop.eup %932 }
  0xfd   : > { %944 = vtanh.f32 %v488_v4  ;;  %v935_v7 = vpop.eup %934  ;;  %v384_v8 = vpop.f32.mrb[12].mxu0 }
  0xfe   : > { %946 = vtanh.f32 %v500_v5  ;;  %v937_v9 = vpop.eup %936  ;;  %v460_v10 = vmul.f32 %v1063_v14, %v384_v8  ;;  %v866_v11 = vpop.f32.mrb[13].mxu0 }
  0xff   : > { %v432_v12 = vpop.f32.mrb[12].mxu1  ;;  %v939_v13 = vpop.eup %938  ;;  %v784_v15 = vpack.c.bf16 %v937_v9, %v933_v6 }
 0x100   : > { %v387_v17 = vpop.f32.mrb[14].mxu0  ;;  %v472_v18 = vmul.f32 %v1063_v14, %v432_v12  ;;  %v890_v19 = vpop.f32.mrb[13].mxu1  ;;  %v814_v20 = vpack.c.bf16 %v939_v13, %v935_v7  ;;  %v489_v21 = vadd.f32 %v1068_v16, %v460_v10  ;;  %v639_v7 = vld [vmem:[%s1091_s5 + $0x54] sm:$0x1] }
 0x101   : > { %v461_v22 = vmul.f32 %v1063_v14, %v387_v17  ;;  %v867_v23 = vpop.f32.mrb[15].mxu0  ;;  %v435_v24 = vpop.f32.mrb[14].mxu1  ;;  %826 = vst [vmem:[%s1091_s5 + $0x8] sm:$0xff] %v784_v15  }
 0x102   : > { %v501_v25 = vadd.f32 %v1068_v16, %v472_v18  ;;  %v473_v26 = vmul.f32 %v1063_v14, %v435_v24  ;;  %v891_v27 = vpop.f32.mrb[15].mxu1  ;;  %832 = vst [vmem:[%s1091_s5 + $0x38] sm:$0xff] %v814_v20   ;;  %948 = vtanh.f32 %v489_v21 }
 0x103   : > { %v490_v28 = vadd.f32 %v1068_v16, %v461_v22 }
 0x104   : > { %950 = vtanh.f32 %v501_v25  ;;  %v502_v29 = vadd.f32 %v1068_v16, %v473_v26  ;;  %v941_v30 = vpop.eup %940 }
 0x105   : > { %952 = vtanh.f32 %v490_v28  ;;  %v392_v32 = vpop.f32.mrb[16].mxu0  ;;  %v440_v36 = vpop.f32.mrb[16].mxu1 }
 0x106   : > { %v943_v31 = vpop.eup %942  ;;  %954 = vtanh.f32 %v502_v29  ;;  %v462_v34 = vmul.f32 %v1063_v14, %v392_v32  ;;  %v870_v35 = vpop.f32.mrb[17].mxu0  ;;  %v474_v40 = vmul.f32 %v1063_v14, %v440_v36 }
 0x107   : > { %v945_v33 = vpop.eup %944  ;;  %v395_v39 = vpop.f32.mrb[18].mxu0 }
 0x108   : > { %v947_v37 = vpop.eup %946  ;;  %v789_v38 = vpack.c.bf16 %v945_v33, %v941_v30  ;;  %v894_v41 = vpop.f32.mrb[17].mxu1  ;;  %v491_v43 = vadd.f32 %v1068_v16, %v462_v34  ;;  %v463_v44 = vmul.f32 %v1063_v14, %v395_v39  ;;  %v503_v47 = vadd.f32 %v1068_v16, %v474_v40 }
 0x109   : > { %v819_v42 = vpack.c.bf16 %v947_v37, %v943_v31  ;;  %v871_v45 = vpop.f32.mrb[19].mxu0  ;;  %v443_v46 = vpop.f32.mrb[18].mxu1 }
 0x10a   : > { %827 = vst [vmem:[%s1091_s5 + $0x10] sm:$0xff] %v789_v38   ;;  %v475_v48 = vmul.f32 %v1063_v14, %v443_v46  ;;  %v895_v49 = vpop.f32.mrb[19].mxu1  ;;  %956 = vtanh.f32 %v491_v43  ;;  %v492_v50 = vadd.f32 %v1068_v16, %v463_v44 }
 0x10b   : > { %833 = vst [vmem:[%s1091_s5 + $0x40] sm:$0xff] %v819_v42   ;;  %958 = vtanh.f32 %v503_v47 }
 0x10c   : > { %v504_v51 = vadd.f32 %v1068_v16, %v475_v48  ;;  %v949_v52 = vpop.eup %948  ;;  %960 = vtanh.f32 %v492_v50 }
 0x10d   : > { %v400_v54 = vpop.f32.mrb[20].mxu0 }
 0x10e   : > { %v951_v53 = vpop.eup %950  ;;  %962 = vtanh.f32 %v504_v51  ;;  %v464_v56 = vmul.f32 %v1063_v14, %v400_v54  ;;  %v874_v57 = vpop.f32.mrb[21].mxu0 }
 0x10f   : > { %v953_v55 = vpop.eup %952  ;;  %v403_v60 = vpop.f32.mrb[22].mxu0 }
 0x110   : > { %v955_v58 = vpop.eup %954  ;;  %v794_v59 = vpack.c.bf16 %v953_v55, %v949_v52  ;;  %v493_v62 = vadd.f32 %v1068_v16, %v464_v56  ;;  %v465_v63 = vmul.f32 %v1063_v14, %v403_v60  ;;  %v875_v0 = vpop.f32.mrb[23].mxu0 }
 0x111   : > { %v824_v61 = vpack.c.bf16 %v955_v58, %v951_v53 }
 0x112   : > { %828 = vst [vmem:[%s1091_s5 + $0x18] sm:$0xff] %v794_v59   ;;  %v494_v1 = vadd.f32 %v1068_v16, %v465_v63  ;;  %964 = vtanh.f32 %v493_v62 }
 0x113   : > { %834 = vst [vmem:[%s1091_s5 + $0x48] sm:$0xff] %v824_v61  }
 0x114   : > { %v957_v2 = vpop.eup %956  ;;  %966 = vtanh.f32 %v494_v1 }
 0x115   : > { %v959_v3 = vpop.eup %958 }
 0x116   : > { %v961_v4 = vpop.eup %960  ;;  %v774_v5 = vpack.c.bf16 %v959_v3, %v959_v3 }
 0x117   : > { %v799_v14 = vpack.c.bf16 %v961_v4, %v957_v2 }
 0x118   : > { %v963_v6 = vpop.eup %962  ;;  %635 = vst [vmem:[%s1091_s5 + $0x50] sm:$0xf] %v774_v5 }
 0x119   : > { %v775_v8 = vpack.c.bf16 %v963_v6, %v963_v6  ;;  %829 = vst [vmem:[%s1091_s5 + $0x20] sm:$0xff] %v799_v14  }
 0x11b   : > { %v640_v9 = vsel %vm638_vm4, %v775_v8, %v639_v7 }
 0x11c   : > { %641 = vst [vmem:[%s1091_s5 + $0x54] sm:$0x1] %v640_v9  ;;  %v965_v16 = vpop.eup %964 }
 0x11e   : > { %v967_v10 = vpop.eup %966 }
 0x11f   : > { %v804_v11 = vpack.c.bf16 %v967_v10, %v965_v16 }
 0x121   : > { %830 = vst [vmem:[%s1091_s5 + $0x28] sm:$0xff] %v804_v11  }
 0x122 PF: > { %s14_s15 = sadd.s32 1, %s974_s15  }
 0x123   : > { %p11_p4 = scmp.ge.s32.totalorder %s14_s15, 4  }
 0x125   :  { %13 = sbr.rel (!%p11_p4) target bundleno = 1 (0x1), region = 66 }

// kernel: discriminator_forward.4
= control target key start
LH: loop header
LB: loop body
LE: loop exit
PB: predicated region body
PF: predicated region fallthrough
CT: control target
= control target key end

     0   :  { %s3812_s15 = smov 0   ;;  %s4495_s0 = inlined_call_operand.vmem [shape: bf16[2,25,3200], index: 0, kind: input, shape index: {}]   ;;  %s4496_s1 = inlined_call_operand.vmem [shape: bf16[3200,128], index: 1, kind: input, shape index: {}]   ;;  %s4497_s2 = inlined_call_operand.vmem [shape: f32[1,128], index: 2, kind: input, shape index: {}]   ;;  %s4498_s3 = inlined_call_operand.vmem [shape: f32[1,128], index: 3, kind: input, shape index: {}]   ;;  %s4499_s4 = inlined_call_operand.vmem [shape: bf16[2,25,128], index: 4, kind: output, shape index: {}]  }
   0x1 LB: > { %s2846_s16 = sadd.s32 4294967295, %s3785_s15   ;;  %p2850_p0 = scmp.ge.s32.totalorder %s3785_s15, 1  ;;  %s3785_s15 = sphi %s3812_s15, %s14_s15  }
   0x2   : > { %p162_p1 = scmp.lt.s32.totalorder %s3785_s15, 3 }
   0x4   : > { %p163_p2 = pnand %p2850_p0, %p162_p1 }
   0x5   : > { %v3497_v0 = vld [vmem:[%s4496_s1 + $0x40] sm:$0xff] (!%p163_p2)   ;;  %v3501_v4 = vld [vmem:[%s4496_s1 + $0x48] sm:$0xff] (!%p163_p2)   ;;  %v3505_v8 = vld [vmem:[%s4496_s1 + $0x50] sm:$0xff] (!%p163_p2)   ;;  %p188_p3 = scmp.lt.s32.totalorder (!%p163_p2), %s2846_s16, 1  ;;  %vm2785_vm0 = vcmask (!%p163_p2), 1040384  }
   0x6   : > { %166 = sbr.rel (%p163_p2) target bundleno = 466 (0x1d2), region = 36  ;;  %v3498_v1 = vld [vmem:[%s4496_s1 + $0xc0] sm:$0xff] (!%p163_p2)   ;;  %3122 = vmatprep.subr.bf16.mxu0 (!%p163_p2), %v3497_v0  ;;  %v3502_v5 = vld [vmem:[%s4496_s1 + $0xc8] sm:$0xff] (!%p163_p2)   ;;  %v3506_v9 = vld [vmem:[%s4496_s1 + $0xd0] sm:$0xff] (!%p163_p2)   ;;  %vm2786_vm1 = vsmask.f32 (!%p163_p2), 256 }
   0x7   : > { %v3499_v2 = vld [vmem:[%s4496_s1] sm:$0xff] (!%p163_p2)   ;;  %3150 = vmatprep.subr.bf16.mxu1 (!%p163_p2), %v3498_v1  ;;  %v3503_v6 = vld [vmem:[%s4496_s1 + $0x8] sm:$0xff] (!%p163_p2)   ;;  %v3507_v10 = vld [vmem:[%s4496_s1 + $0x10] sm:$0xff] (!%p163_p2)  }
   0x8   : > { %v3500_v3 = vld [vmem:[%s4496_s1 + $0x80] sm:$0xff] (!%p163_p2)   ;;  %3123 = vmatpush3.bf16.msra.mxu0 (!%p163_p2), %v3499_v2  ;;  %v3504_v7 = vld [vmem:[%s4496_s1 + $0x88] sm:$0xff] (!%p163_p2)   ;;  %v3508_v11 = vld [vmem:[%s4496_s1 + $0x90] sm:$0xff] (!%p163_p2)  }
   0x9   : > { %3151 = vmatpush3.bf16.msra.mxu1 (!%p163_p2), %v3500_v3  ;;  %3124 = vmatprep.subr.bf16.mxu0 (!%p163_p2), %v3501_v4  ;;  %v3509_v12 = vld [vmem:[%s4496_s1 + $0x58] sm:$0xff] (!%p163_p2)   ;;  %v3513_v16 = vld [vmem:[%s4496_s1 + $0x60] sm:$0xff] (!%p163_p2)   ;;  %v3517_v20 = vld [vmem:[%s4496_s1 + $0x68] sm:$0xff] (!%p163_p2)  }
   0xa   : > { %3152 = vmatprep.subr.bf16.mxu1 (!%p163_p2), %v3502_v5  ;;  %v3510_v13 = vld [vmem:[%s4496_s1 + $0xd8] sm:$0xff] (!%p163_p2)   ;;  %v3514_v17 = vld [vmem:[%s4496_s1 + $0xe0] sm:$0xff] (!%p163_p2)   ;;  %v3518_v21 = vld [vmem:[%s4496_s1 + $0xe8] sm:$0xff] (!%p163_p2)  }
   0xb   : > { %v3511_v14 = vld [vmem:[%s4496_s1 + $0x18] sm:$0xff] (!%p163_p2)   ;;  %v3515_v18 = vld [vmem:[%s4496_s1 + $0x20] sm:$0xff] (!%p163_p2)   ;;  %v3519_v22 = vld [vmem:[%s4496_s1 + $0x28] sm:$0xff] (!%p163_p2)  }
   0xc   : > { %3125 = vmatpush3.bf16.msra.mxu0 (!%p163_p2), %v3503_v6  ;;  %v3512_v15 = vld [vmem:[%s4496_s1 + $0x98] sm:$0xff] (!%p163_p2)   ;;  %v3516_v19 = vld [vmem:[%s4496_s1 + $0xa0] sm:$0xff] (!%p163_p2)   ;;  %v3520_v23 = vld [vmem:[%s4496_s1 + $0xa8] sm:$0xff] (!%p163_p2)  }
   0xd   : > { %3153 = vmatpush3.bf16.msra.mxu1 %v3504_v7  ;;  %3126 = vmatprep.subr.bf16.mxu0 %v3505_v8  ;;  %s4501_s16 = smov (!%p188_p3, %s2846_s16), 1  ;;  %v3521_v24 = vld [vmem:[%s4496_s1 + $0x70] sm:$0xff]   ;;  %v3525_v28 = vld [vmem:[%s4496_s1 + $0x78] sm:$0xff]   ;;  %v3535_v36 = vld [vmem:[%s4496_s1 + $0x140] sm:$0xff]  }
   0xe   : > { %3154 = vmatprep.subr.bf16.mxu1 %v3506_v9  ;;  %v3522_v25 = vld [vmem:[%s4496_s1 + $0xf0] sm:$0xff]   ;;  %s3488_s21 = smul.u32 400, %s4501_s16  ;;  %v3526_v29 = vld [vmem:[%s4496_s1 + $0xf8] sm:$0xff]   ;;  %v3536_v37 = vld [vmem:[%s4496_s1 + $0x100] sm:$0xff]   ;;  %s3112_s30 = sshll.u32 %s4501_s16, 4 }
   0xf   : > { %v3523_v26 = vld [vmem:[%s4496_s1 + $0x30] sm:$0xff]   ;;  %v3527_v30 = vld [vmem:[%s4496_s1 + $0x38] sm:$0xff]   ;;  %v3537_v38 = vld [vmem:[%s4496_s1 + $0x1c0] sm:$0xff]   ;;  %s197_s8 = scalar_lea.vmem %s4499_s4, %s3112_s30 }
  0x10   : > { %3127 = vmatpush3.bf16.msra.mxu0 %v3507_v10  ;;  %v3524_v27 = vld [vmem:[%s4496_s1 + $0xb0] sm:$0xff]   ;;  %s3920_s6 = scalar_lea.vmem %s4495_s0, %s3488_s21  ;;  %v3528_v31 = vld [vmem:[%s4496_s1 + $0xb8] sm:$0xff]   ;;  %v3538_v39 = vld [vmem:[%s4496_s1 + $0x180] sm:$0xff]  }
  0x11   : > { %3155 = vmatpush3.bf16.msra.mxu1 %v3508_v11  ;;  %3128 = vmatprep.subr.bf16.mxu0 %v3509_v12  ;;  %v3529_v32 = vld [vmem:[%s3920_s6] ss:$100 sps:$4 sm:$0xff]   ;;  %v3532_v34 = vld [vmem:[%s3920_s6 + $0x8] ss:$100 sps:$4 sm:$0xff]   ;;  %v3543_v44 = vld [vmem:[%s4496_s1 + $0x150] sm:$0xff]  }
  0x12   : > { %3156 = vmatprep.subr.bf16.mxu1 %v3510_v13  ;;  %v3531_v33 = vld [vmem:[%s3920_s6 + $0x4] ss:$100 sps:$4 sm:$0xff]   ;;  %v3534_v35 = vld [vmem:[%s3920_s6 + $0xc] ss:$100 sps:$4 sm:$0xff]   ;;  %v3547_v48 = vld [vmem:[%s4496_s1 + $0x158] sm:$0xff]  }
  0x13   : > { %2135 = vmatprep.mubr.bf16.mxu0 %v3531_v33  ;;  %2184 = vmatprep.mubr.bf16.mxu1 %v3534_v35  ;;  %v3539_v40 = vld [vmem:[%s4496_s1 + $0x148] sm:$0xff]   ;;  %v3544_v45 = vld [vmem:[%s4496_s1 + $0x110] sm:$0xff]   ;;  %v3548_v49 = vld [vmem:[%s4496_s1 + $0x118] sm:$0xff]  }
  0x14   : > { %3129 = vmatpush3.bf16.msra.mxu0 %v3511_v14  ;;  %v3540_v41 = vld [vmem:[%s4496_s1 + $0x108] sm:$0xff]   ;;  %v3545_v46 = vld [vmem:[%s4496_s1 + $0x1d0] sm:$0xff]   ;;  %v3549_v50 = vld [vmem:[%s4496_s1 + $0x1d8] sm:$0xff]  }
  0x15   : > { %3157 = vmatpush3.bf16.msra.mxu1 %v3512_v15  ;;  %3130 = vmatprep.subr.bf16.mxu0 %v3513_v16  ;;  %v3541_v42 = vld [vmem:[%s4496_s1 + $0x1c8] sm:$0xff]   ;;  %v3546_v47 = vld [vmem:[%s4496_s1 + $0x190] sm:$0xff]   ;;  %v3550_v51 = vld [vmem:[%s4496_s1 + $0x198] sm:$0xff]  }
  0x16   : > { %3158 = vmatprep.subr.bf16.mxu1 %v3514_v17  ;;  %v3542_v43 = vld [vmem:[%s4496_s1 + $0x188] sm:$0xff]   ;;  %v3551_v52 = vld [vmem:[%s4496_s1 + $0x160] sm:$0xff]   ;;  %v3558_v58 = vld [vmem:[%s3920_s6 + $0xd4] ss:$100 sps:$4 sm:$0x1f]  }
  0x17   : > { %v3552_v53 = vld [vmem:[%s4496_s1 + $0x120] sm:$0xff]   ;;  %v3555_v56 = vld [vmem:[%s4496_s1 + $0x168] sm:$0xff]   ;;  %v3562_v61 = vld [vmem:[%s3920_s6 + $0xd0] ss:$100 sps:$4 sm:$0x1f]  }
  0x18   : > { %3131 = vmatpush3.bf16.msra.mxu0 %v3515_v18  ;;  %v3553_v54 = vld [vmem:[%s4496_s1 + $0x1e0] sm:$0xff]   ;;  %v3556_v57 = vld [vmem:[%s3920_s6 + $0xcc] ss:$100 sps:$4 sm:$0x1f]   ;;  %v3569_v4 = vld [vmem:[%s4496_s1 + $0x178] sm:$0xff]  }
  0x19   : > { %3159 = vmatpush3.bf16.msra.mxu1 %v3516_v19  ;;  %3132 = vmatprep.subr.bf16.mxu0 %v3517_v20  ;;  %v3554_v55 = vld [vmem:[%s4496_s1 + $0x1a0] sm:$0xff]   ;;  %v3560_v59 = vld [vmem:[%s4496_s1 + $0x128] sm:$0xff]   ;;  %v3565_v0 = vld [vmem:[%s4496_s1 + $0x170] sm:$0xff]  }
  0x1a   : > { %3160 = vmatprep.subr.bf16.mxu1 %v3518_v21  ;;  %v3561_v60 = vld [vmem:[%s3920_s6 + $0xc8] ss:$100 sps:$4 sm:$0x1f]   ;;  %v3566_v1 = vld [vmem:[%s4496_s1 + $0x130] sm:$0xff]   ;;  %v3570_v5 = vld [vmem:[%s4496_s1 + $0x138] sm:$0xff]  }
  0x1b   : > { %v3563_v62 = vld [vmem:[%s4496_s1 + $0x1e8] sm:$0xff]   ;;  %v3567_v2 = vld [vmem:[%s4496_s1 + $0x1f0] sm:$0xff]   ;;  %v3571_v6 = vld [vmem:[%s4496_s1 + $0x1f8] sm:$0xff]  }
  0x1c   : > { %3133 = vmatpush3.bf16.msra.mxu0 %v3519_v22  ;;  %v3564_v63 = vld [vmem:[%s4496_s1 + $0x1a8] sm:$0xff]   ;;  %v3568_v3 = vld [vmem:[%s4496_s1 + $0x1b0] sm:$0xff]   ;;  %v3575_v9 = vld [vmem:[%s4496_s1 + $0x1b8] sm:$0xff]  }
  0x1d   : > { %3161 = vmatpush3.bf16.msra.mxu1 %v3520_v23  ;;  %3134 = vmatprep.subr.bf16.mxu0 %v3521_v24  ;;  %v3572_v7 = vld [vmem:[%s3920_s6 + $0x10] ss:$100 sps:$4 sm:$0xff]   ;;  %v3576_v10 = vld [vmem:[%s4496_s1 + $0x240] sm:$0xff]   ;;  %v3577_v11 = vld [vmem:[%s3920_s6 + $0x18] ss:$100 sps:$4 sm:$0xff]  }
  0x1e   : > { %3162 = vmatprep.subr.bf16.mxu1 %v3522_v25  ;;  %v3574_v8 = vld [vmem:[%s3920_s6 + $0x14] ss:$100 sps:$4 sm:$0xff]   ;;  %v3579_v12 = vld [vmem:[%s3920_s6 + $0x1c] ss:$100 sps:$4 sm:$0xff]   ;;  %v3583_v16 = vld [vmem:[%s4496_s1 + $0x248] sm:$0xff]  }
  0x1f   : > { %v3580_v13 = vld [vmem:[%s4496_s1 + $0x200] sm:$0xff]   ;;  %v3584_v17 = vld [vmem:[%s4496_s1 + $0x208] sm:$0xff]   ;;  %v3589_v21 = vld [vmem:[%s3920_s6 + $0xd8] ss:$100 sps:$4 sm:$0x1f]  }
  0x20   : > { %3135 = vmatpush3.bf16.msra.mxu0 %v3523_v26  ;;  %v3581_v14 = vld [vmem:[%s4496_s1 + $0x2c0] sm:$0xff]   ;;  %v3585_v18 = vld [vmem:[%s4496_s1 + $0x2c8] sm:$0xff]   ;;  %v3590_v22 = vld [vmem:[%s4496_s1 + $0x250] sm:$0xff]  }
  0x21   : > { %3163 = vmatpush3.bf16.msra.mxu1 %v3524_v27  ;;  %3136 = vmatprep.subr.bf16.mxu0 %v3525_v28  ;;  %v3582_v15 = vld [vmem:[%s4496_s1 + $0x280] sm:$0xff]   ;;  %v3588_v20 = vld [vmem:[%s4496_s1 + $0x288] sm:$0xff]   ;;  %v3593_v24 = vld [vmem:[%s4496_s1 + $0x210] sm:$0xff]  }
  0x22   : > { %3164 = vmatprep.subr.bf16.mxu1 %v3526_v29  ;;  %v3586_v19 = vld [vmem:[%s3920_s6 + $0xdc] ss:$100 sps:$4 sm:$0x1f]   ;;  %v3591_v23 = vld [vmem:[%s3920_s6 + $0xe4] ss:$100 sps:$4 sm:$0x1f]   ;;  %vm2787_vm2 = vmand %vm2785_vm0, %vm2786_vm1 }
  0x23   : > { %v3594_v25 = vld [vmem:[%s3920_s6 + $0xe0] ss:$100 sps:$4 sm:$0x1f]   ;;  %v3595_v26 = vld [vmem:[%s4496_s1 + $0x2d0] sm:$0xff]   ;;  %v3597_v28 = vld [vmem:[%s4496_s1 + $0x258] sm:$0xff]  }
  0x24   : > { %3137 = vmatpush3.bf16.msra.mxu0 %v3527_v30  ;;  %v3596_v27 = vld [vmem:[%s4496_s1 + $0x290] sm:$0xff]   ;;  %v3598_v29 = vld [vmem:[%s4496_s1 + $0x218] sm:$0xff]   ;;  %v3602_v33 = vld [vmem:[%s4496_s1 + $0x220] sm:$0xff]  }
  0x25   : > { %3165 = vmatpush3.bf16.msra.mxu1 %v3528_v31  ;;  %3178 = vmatprep.subr.bf16.mxu0 %v3535_v36  ;;  %v3599_v30 = vld [vmem:[%s4496_s1 + $0x2d8] sm:$0xff]   ;;  %v3604_v35 = vld [vmem:[%s4496_s1 + $0x2a0] sm:$0xff]   ;;  %v3605_v36 = vld [vmem:[%s4496_s1 + $0x268] sm:$0xff]  }
  0x26   : > { %3206 = vmatprep.subr.bf16.mxu1 %v3537_v38  ;;  %v3600_v31 = vld [vmem:[%s4496_s1 + $0x298] sm:$0xff]   ;;  %v3607_v38 = vld [vmem:[%s4496_s1 + $0x2e8] sm:$0xff]  }
  0x27   : > { %2136 = vmatmul.mubr.bf16.vlgmr.msra.gmra.mrb[0].mxu0 %v3529_v32  ;;  %v3601_v32 = vld [vmem:[%s4496_s1 + $0x260] sm:$0xff]  }
  0x28   : > { %2185 = vmatmul.mubr.bf16.vlgmr.msra.gmra.mrb[0].mxu1 %v3532_v34  ;;  %3179 = vmatpush3.bf16.msra.mxu0 %v3536_v37  ;;  %v3603_v34 = vld [vmem:[%s4496_s1 + $0x2e0] sm:$0xff]   ;;  %v3606_v37 = vld [vmem:[%s4496_s1 + $0x228] sm:$0xff]  }
  0x29   : > { %3207 = vmatpush3.bf16.msra.mxu1 %v3538_v39  ;;  %3180 = vmatprep.subr.bf16.mxu0 %v3539_v40  ;;  %v3608_v39 = vld [vmem:[%s4496_s1 + $0x2a8] sm:$0xff]   ;;  %v3609_v40 = vld [vmem:[%s4496_s1 + $0x270] sm:$0xff]  }
  0x2a   : > { %3208 = vmatprep.subr.bf16.mxu1 %v3541_v42  ;;  %2143 = vmatprep.mubr.bf16.mxu0 %v3556_v57  ;;  %v3611_v42 = vld [vmem:[%s4496_s1 + $0x2f0] sm:$0xff]   ;;  %v3628_v57 = vld [vmem:[%s4496_s1 + $0x308] sm:$0xff]  }
  0x2b   : > { %2192 = vmatprep.mubr.bf16.mxu1 %v3558_v58  ;;  %v3629_v58 = vld [vmem:[%s4496_s1 + $0x3c8] sm:$0xff]  }
  0x2c   : > { %3181 = vmatpush3.bf16.msra.mxu0 %v3540_v41  ;;  %v3610_v41 = vld [vmem:[%s4496_s1 + $0x230] sm:$0xff]  }
  0x2d   : > { %3209 = vmatpush3.bf16.msra.mxu1 %v3542_v43  ;;  %3182 = vmatprep.subr.bf16.mxu0 %v3543_v44  ;;  %v3612_v43 = vld [vmem:[%s4496_s1 + $0x2b0] sm:$0xff]   ;;  %v3613_v44 = vld [vmem:[%s4496_s1 + $0x278] sm:$0xff]  }
  0x2e   : > { %3210 = vmatprep.subr.bf16.mxu1 %v3545_v46  ;;  %v3615_v46 = vld [vmem:[%s4496_s1 + $0x2f8] sm:$0xff]  }
  0x2f   : > { %2144 = vmatmul.mubr.bf16.gmra.mrb[4].mxu0 %v3561_v60  ;;  %v3632_v60 = vld [vmem:[%s4496_s1 + $0x388] sm:$0xff]  }
  0x30   : > { %3183 = vmatpush3.bf16.msra.mxu0 %v3544_v45  ;;  %2193 = vmatmul.mubr.bf16.gmra.mrb[4].mxu1 %v3562_v61  ;;  %v3614_v45 = vld [vmem:[%s4496_s1 + $0x238] sm:$0xff]   ;;  %v3633_v61 = vld [vmem:[%s3920_s6 + $0xe8] ss:$100 sps:$4 sm:$0x1f]  }
  0x31   : > { %3211 = vmatpush3.bf16.msra.mxu1 %v3546_v47  ;;  %3184 = vmatprep.subr.bf16.mxu0 %v3547_v48  ;;  %v3616_v47 = vld [vmem:[%s3920_s6 + $0x20] ss:$100 sps:$4 sm:$0xff]  }
  0x32   : > { %3212 = vmatprep.subr.bf16.mxu1 %v3549_v50  ;;  %2233 = vmatprep.mubr.bf16.mxu0 %v3574_v8  ;;  %v3618_v48 = vld [vmem:[%s3920_s6 + $0x24] ss:$100 sps:$4 sm:$0xff]  }
  0x33   : > { %2282 = vmatprep.mubr.bf16.mxu1 %v3579_v12  ;;  %v3620_v50 = vld [vmem:[%s4496_s1 + $0x340] sm:$0xff]   ;;  %v3649_v12 = vld [vmem:[%s4496_s1 + $0x368] sm:$0xff]  }
  0x34   : > { %3185 = vmatpush3.bf16.msra.mxu0 %v3548_v49  ;;  %v3619_v49 = vld [vmem:[%s4496_s1 + $0x2b8] sm:$0xff]   ;;  %v3645_v8 = vld [vmem:[%s4496_s1 + $0x360] sm:$0xff]  }
  0x35   : > { %3213 = vmatpush3.bf16.msra.mxu1 %v3550_v51  ;;  %3186 = vmatprep.subr.bf16.mxu0 %v3551_v52  ;;  %v3621_v51 = vld [vmem:[%s3920_s6 + $0x28] ss:$100 sps:$4 sm:$0xff]  }
  0x36   : > { %3214 = vmatprep.subr.bf16.mxu1 %v3553_v54  ;;  %v3623_v52 = vld [vmem:[%s3920_s6 + $0x2c] ss:$100 sps:$4 sm:$0xff]   ;;  %v3625_v54 = vld [vmem:[%s4496_s1 + $0x3c0] sm:$0xff]  }
  0x38   : > { %3187 = vmatpush3.bf16.msra.mxu0 %v3552_v53  ;;  %v3624_v53 = vld [vmem:[%s4496_s1 + $0x300] sm:$0xff]  }
  0x39   : > { %3215 = vmatpush3.bf16.msra.mxu1 %v3554_v55  ;;  %3188 = vmatprep.subr.bf16.mxu0 %v3555_v56  ;;  %v3626_v55 = vld [vmem:[%s4496_s1 + $0x380] sm:$0xff]   ;;  %v3627_v56 = vld [vmem:[%s4496_s1 + $0x348] sm:$0xff]  }
  0x3a   : > { %3216 = vmatprep.subr.bf16.mxu1 %v3563_v62  ;;  %v3634_v62 = vld [vmem:[%s4496_s1 + $0x350] sm:$0xff]  }
  0x3c   : > { %3189 = vmatpush3.bf16.msra.mxu0 %v3560_v59  ;;  %v3630_v59 = vld [vmem:[%s3920_s6 + $0xec] ss:$100 sps:$4 sm:$0x1f]  }
  0x3d   : > { %3217 = vmatpush3.bf16.msra.mxu1 %v3564_v63  ;;  %3190 = vmatprep.subr.bf16.mxu0 %v3565_v0  ;;  %v3635_v63 = vld [vmem:[%s3920_s6 + $0xf4] ss:$100 sps:$4 sm:$0x1f]  }
  0x3e   : > { %3218 = vmatprep.subr.bf16.mxu1 %v3567_v2  ;;  %v3637_v0 = vld [vmem:[%s4496_s1 + $0x310] sm:$0xff]  }
  0x3f   : > { %v3639_v2 = vld [vmem:[%s4496_s1 + $0x3d0] sm:$0xff]  }
  0x40   : > { %3191 = vmatpush3.bf16.msra.mxu0 %v3566_v1  ;;  %v3638_v1 = vld [vmem:[%s3920_s6 + $0xf0] ss:$100 sps:$4 sm:$0x1f]  }
  0x41   : > { %3219 = vmatpush3.bf16.msra.mxu1 %v3568_v3  ;;  %3192 = vmatprep.subr.bf16.mxu0 %v3569_v4  ;;  %v3640_v3 = vld [vmem:[%s4496_s1 + $0x390] sm:$0xff]   ;;  %v3641_v4 = vld [vmem:[%s4496_s1 + $0x358] sm:$0xff]  }
  0x42   : > { %3220 = vmatprep.subr.bf16.mxu1 %v3571_v6  ;;  %v3643_v6 = vld [vmem:[%s4496_s1 + $0x3d8] sm:$0xff]  }
  0x44   : > { %3193 = vmatpush3.bf16.msra.mxu0 %v3570_v5  ;;  %v3642_v5 = vld [vmem:[%s4496_s1 + $0x318] sm:$0xff]  }
  0x45   : > { %3221 = vmatpush3.bf16.msra.mxu1 %v3575_v9  ;;  %3234 = vmatprep.subr.bf16.mxu0 %v3576_v10  ;;  %v3646_v9 = vld [vmem:[%s4496_s1 + $0x320] sm:$0xff]  }
  0x46   : > { %3262 = vmatprep.subr.bf16.mxu1 %v3581_v14  ;;  %v3647_v10 = vld [vmem:[%s4496_s1 + $0x3e0] sm:$0xff]   ;;  %v3651_v14 = vld [vmem:[%s4496_s1 + $0x3e8] sm:$0xff]  }
  0x47   : > { %2234 = vmatmul.mubr.bf16.vlgmr.msra.gmra.mrb[8].mxu0 %v3572_v7  ;;  %v3644_v7 = vld [vmem:[%s4496_s1 + $0x398] sm:$0xff]  }
  0x48   : > { %3235 = vmatpush3.bf16.msra.mxu0 %v3580_v13  ;;  %2283 = vmatmul.mubr.bf16.vlgmr.msra.gmra.mrb[8].mxu1 %v3577_v11  ;;  %v3648_v11 = vld [vmem:[%s4496_s1 + $0x3a0] sm:$0xff]   ;;  %v3650_v13 = vld [vmem:[%s4496_s1 + $0x328] sm:$0xff]  }
  0x49   : > { %3263 = vmatpush3.bf16.msra.mxu1 %v3582_v15  ;;  %3236 = vmatprep.subr.bf16.mxu0 %v3583_v16  ;;  %v3652_v15 = vld [vmem:[%s4496_s1 + $0x3a8] sm:$0xff]   ;;  %v3653_v16 = vld [vmem:[%s4496_s1 + $0x370] sm:$0xff]  }
  0x4a   : > { %3264 = vmatprep.subr.bf16.mxu1 %v3585_v18  ;;  %2241 = vmatprep.mubr.bf16.mxu0 %v3586_v19  ;;  %v3655_v18 = vld [vmem:[%s4496_s1 + $0x3f0] sm:$0xff]  }
  0x4b   : > { %2290 = vmatprep.mubr.bf16.mxu1 %v3591_v23  ;;  %v3656_v19 = vld [vmem:[%s4496_s1 + $0x3b0] sm:$0xff]  }
  0x4c   : > { %3237 = vmatpush3.bf16.msra.mxu0 %v3584_v17  ;;  %v3654_v17 = vld [vmem:[%s4496_s1 + $0x330] sm:$0xff]  }
  0x4d   : > { %3265 = vmatpush3.bf16.msra.mxu1 %v3588_v20  ;;  %3238 = vmatprep.subr.bf16.mxu0 %v3590_v22  ;;  %v3657_v20 = vld [vmem:[%s4496_s1 + $0x378] sm:$0xff]   ;;  %v3660_v23 = vld [vmem:[%s3920_s6 + $0x30] ss:$100 sps:$4 sm:$0xff]  }
  0x4e   : > { %3266 = vmatprep.subr.bf16.mxu1 %v3595_v26  ;;  %v3659_v22 = vld [vmem:[%s4496_s1 + $0x3f8] sm:$0xff]   ;;  %v3664_v26 = vld [vmem:[%s4496_s1 + $0x440] sm:$0xff]  }
  0x4f   : > { %2242 = vmatmul.mubr.bf16.gmra.mrb[12].mxu0 %v3589_v21  ;;  %v3658_v21 = vld [vmem:[%s4496_s1 + $0x338] sm:$0xff]  }
  0x50   : > { %3239 = vmatpush3.bf16.msra.mxu0 %v3593_v24  ;;  %2291 = vmatmul.mubr.bf16.gmra.mrb[12].mxu1 %v3594_v25  ;;  %v3662_v24 = vld [vmem:[%s3920_s6 + $0x34] ss:$100 sps:$4 sm:$0xff]  }
  0x51   : > { %3267 = vmatpush3.bf16.msra.mxu1 %v3596_v27  ;;  %3240 = vmatprep.subr.bf16.mxu0 %v3597_v28  ;;  %v3663_v25 = vld [vmem:[%s4496_s1 + $0x3b8] sm:$0xff]  }
  0x52   : > { %3268 = vmatprep.subr.bf16.mxu1 %v3599_v30  ;;  %2331 = vmatprep.mubr.bf16.mxu0 %v3618_v48  ;;  %v3665_v27 = vld [vmem:[%s3920_s6 + $0x38] ss:$100 sps:$4 sm:$0xff]   ;;  %v3669_v30 = vld [vmem:[%s4496_s1 + $0x4c0] sm:$0xff]  }
  0x53   : > { %2380 = vmatprep.mubr.bf16.mxu1 %v3623_v52  ;;  %v3667_v28 = vld [vmem:[%s3920_s6 + $0x3c] ss:$100 sps:$4 sm:$0xff]   ;;  %v3693_v52 = vld [vmem:[%s4496_s1 + $0x468] sm:$0xff]  }
  0x54   : > { %3241 = vmatpush3.bf16.msra.mxu0 %v3598_v29  ;;  %v3668_v29 = vld [vmem:[%s4496_s1 + $0x400] sm:$0xff]  }
  0x55   : > { %3269 = vmatpush3.bf16.msra.mxu1 %v3600_v31  ;;  %3242 = vmatprep.subr.bf16.mxu0 %v3601_v32  ;;  %v3670_v31 = vld [vmem:[%s4496_s1 + $0x480] sm:$0xff]   ;;  %v3671_v32 = vld [vmem:[%s4496_s1 + $0x448] sm:$0xff]  }
  0x56   : > { %3270 = vmatprep.subr.bf16.mxu1 %v3603_v34  ;;  %v3673_v34 = vld [vmem:[%s4496_s1 + $0x4c8] sm:$0xff]   ;;  %v3689_v48 = vld [vmem:[%s4496_s1 + $0x460] sm:$0xff]  }
  0x58   : > { %3243 = vmatpush3.bf16.msra.mxu0 %v3602_v33  ;;  %v3672_v33 = vld [vmem:[%s4496_s1 + $0x408] sm:$0xff]  }
  0x59   : > { %3271 = vmatpush3.bf16.msra.mxu1 %v3604_v35  ;;  %3244 = vmatprep.subr.bf16.mxu0 %v3605_v36  ;;  %v3674_v35 = vld [vmem:[%s3920_s6 + $0xfc] ss:$100 sps:$4 sm:$0x1f]   ;;  %v3676_v36 = vld [vmem:[%s4496_s1 + $0x488] sm:$0xff]  }
  0x5a   : > { %3272 = vmatprep.subr.bf16.mxu1 %v3607_v38  ;;  %v3678_v38 = vld [vmem:[%s4496_s1 + $0x450] sm:$0xff]  }
  0x5c   : > { %3245 = vmatpush3.bf16.msra.mxu0 %v3606_v37  ;;  %v3677_v37 = vld [vmem:[%s3920_s6 + $0xf8] ss:$100 sps:$4 sm:$0x1f]  }
  0x5d   : > { %3273 = vmatpush3.bf16.msra.mxu1 %v3608_v39  ;;  %3246 = vmatprep.subr.bf16.mxu0 %v3609_v40  ;;  %v3679_v39 = vld [vmem:[%s3920_s6 + $0x104] ss:$100 sps:$4 sm:$0x1f]   ;;  %v3681_v40 = vld [vmem:[%s4496_s1 + $0x410] sm:$0xff]  }
  0x5e   : > { %3274 = vmatprep.subr.bf16.mxu1 %v3611_v42  ;;  %v3683_v42 = vld [vmem:[%s4496_s1 + $0x4d0] sm:$0xff]  }
  0x60   : > { %3247 = vmatpush3.bf16.msra.mxu0 %v3610_v41  ;;  %v3682_v41 = vld [vmem:[%s3920_s6 + $0x100] ss:$100 sps:$4 sm:$0x1f]  }
  0x61   : > { %3275 = vmatpush3.bf16.msra.mxu1 %v3612_v43  ;;  %3248 = vmatprep.subr.bf16.mxu0 %v3613_v44  ;;  %v3684_v43 = vld [vmem:[%s4496_s1 + $0x490] sm:$0xff]   ;;  %v3685_v44 = vld [vmem:[%s4496_s1 + $0x458] sm:$0xff]  }
  0x62   : > { %3276 = vmatprep.subr.bf16.mxu1 %v3615_v46  ;;  %v3687_v46 = vld [vmem:[%s4496_s1 + $0x4d8] sm:$0xff]  }
  0x64   : > { %3249 = vmatpush3.bf16.msra.mxu0 %v3614_v45  ;;  %v3686_v45 = vld [vmem:[%s4496_s1 + $0x418] sm:$0xff]  }
  0x65   : > { %3277 = vmatpush3.bf16.msra.mxu1 %v3619_v49  ;;  %3290 = vmatprep.subr.bf16.mxu0 %v3620_v50  ;;  %v3690_v49 = vld [vmem:[%s4496_s1 + $0x420] sm:$0xff]  }
  0x66   : > { %3318 = vmatprep.subr.bf16.mxu1 %v3625_v54  ;;  %v3691_v50 = vld [vmem:[%s4496_s1 + $0x4e0] sm:$0xff]   ;;  %v3695_v54 = vld [vmem:[%s4496_s1 + $0x4e8] sm:$0xff]  }
  0x67   : > { %2332 = vmatmul.mubr.bf16.vlgmr.msra.gmra.mrb[16].mxu0 %v3616_v47  ;;  %v3688_v47 = vld [vmem:[%s4496_s1 + $0x498] sm:$0xff]  }
  0x68   : > { %3291 = vmatpush3.bf16.msra.mxu0 %v3624_v53  ;;  %2381 = vmatmul.mubr.bf16.vlgmr.msra.gmra.mrb[16].mxu1 %v3621_v51  ;;  %v3692_v51 = vld [vmem:[%s4496_s1 + $0x4a0] sm:$0xff]   ;;  %v3694_v53 = vld [vmem:[%s4496_s1 + $0x428] sm:$0xff]  }
  0x69   : > { %3319 = vmatpush3.bf16.msra.mxu1 %v3626_v55  ;;  %3292 = vmatprep.subr.bf16.mxu0 %v3627_v56  ;;  %v3696_v55 = vld [vmem:[%s4496_s1 + $0x4a8] sm:$0xff]   ;;  %v3697_v56 = vld [vmem:[%s4496_s1 + $0x470] sm:$0xff]  }
  0x6a   : > { %3320 = vmatprep.subr.bf16.mxu1 %v3629_v58  ;;  %2339 = vmatprep.mubr.bf16.mxu0 %v3630_v59  ;;  %v3699_v58 = vld [vmem:[%s4496_s1 + $0x4f0] sm:$0xff]  }
  0x6b   : > { %2388 = vmatprep.mubr.bf16.mxu1 %v3635_v63  ;;  %v3700_v59 = vld [vmem:[%s4496_s1 + $0x4b0] sm:$0xff]   ;;  %v3704_v63 = vld [vmem:[%s3920_s6 + $0x40] ss:$100 sps:$4 sm:$0xff]  }
  0x6c   : > { %3293 = vmatpush3.bf16.msra.mxu0 %v3628_v57  ;;  %v3698_v57 = vld [vmem:[%s4496_s1 + $0x430] sm:$0xff]  }
  0x6d   : > { %3321 = vmatpush3.bf16.msra.mxu1 %v3632_v60  ;;  %3294 = vmatprep.subr.bf16.mxu0 %v3634_v62  ;;  %v3701_v60 = vld [vmem:[%s4496_s1 + $0x478] sm:$0xff]  }
  0x6e   : > { %3322 = vmatprep.subr.bf16.mxu1 %v3639_v2  ;;  %v3703_v62 = vld [vmem:[%s4496_s1 + $0x4f8] sm:$0xff]   ;;  %v3708_v2 = vld [vmem:[%s4496_s1 + $0x540] sm:$0xff]  }
  0x6f   : > { %2340 = vmatmul.mubr.bf16.gmra.mrb[20].mxu0 %v3633_v61  ;;  %v3702_v61 = vld [vmem:[%s4496_s1 + $0x438] sm:$0xff]  }
  0x70   : > { %3295 = vmatpush3.bf16.msra.mxu0 %v3637_v0  ;;  %2389 = vmatmul.mubr.bf16.gmra.mrb[20].mxu1 %v3638_v1  ;;  %v3706_v0 = vld [vmem:[%s3920_s6 + $0x44] ss:$100 sps:$4 sm:$0xff]   ;;  %v3707_v1 = vld [vmem:[%s4496_s1 + $0x4b8] sm:$0xff]  }
  0x71   : > { %3323 = vmatpush3.bf16.msra.mxu1 %v3640_v3  ;;  %3296 = vmatprep.subr.bf16.mxu0 %v3641_v4  ;;  %v3709_v3 = vld [vmem:[%s3920_s6 + $0x48] ss:$100 sps:$4 sm:$0xff]  }
  0x72   : > { %3324 = vmatprep.subr.bf16.mxu1 %v3643_v6  ;;  %2429 = vmatprep.mubr.bf16.mxu0 %v3662_v24  ;;  %v3711_v4 = vld [vmem:[%s3920_s6 + $0x4c] ss:$100 sps:$4 sm:$0xff]   ;;  %v3713_v6 = vld [vmem:[%s4496_s1 + $0x5c0] sm:$0xff]  }
  0x73   : > { %2478 = vmatprep.mubr.bf16.mxu1 %v3667_v28  ;;  %v3733_v24 = vld [vmem:[%s4496_s1 + $0x560] sm:$0xff]   ;;  %v3737_v28 = vld [vmem:[%s4496_s1 + $0x568] sm:$0xff]  }
  0x74   : > { %3297 = vmatpush3.bf16.msra.mxu0 %v3642_v5  ;;  %v3712_v5 = vld [vmem:[%s4496_s1 + $0x500] sm:$0xff]  }
  0x75   : > { %3325 = vmatpush3.bf16.msra.mxu1 %v3644_v7  ;;  %3298 = vmatprep.subr.bf16.mxu0 %v3645_v8  ;;  %v3714_v7 = vld [vmem:[%s4496_s1 + $0x580] sm:$0xff]   ;;  %v3715_v8 = vld [vmem:[%s4496_s1 + $0x548] sm:$0xff]  }
  0x76   : > { %3326 = vmatprep.subr.bf16.mxu1 %v3647_v10  ;;  %v3717_v10 = vld [vmem:[%s4496_s1 + $0x5c8] sm:$0xff]  }
  0x78   : > { %3299 = vmatpush3.bf16.msra.mxu0 %v3646_v9  ;;  %v3716_v9 = vld [vmem:[%s4496_s1 + $0x508] sm:$0xff]  }
  0x79   : > { %3327 = vmatpush3.bf16.msra.mxu1 %v3648_v11  ;;  %3300 = vmatprep.subr.bf16.mxu0 %v3649_v12  ;;  %v3718_v11 = vld [vmem:[%s3920_s6 + $0x10c] ss:$100 sps:$4 sm:$0x1f]  }
  0x7a   : > { %3328 = vmatprep.subr.bf16.mxu1 %v3651_v14  ;;  %v3720_v12 = vld [vmem:[%s4496_s1 + $0x588] sm:$0xff]   ;;  %v3722_v14 = vld [vmem:[%s4496_s1 + $0x550] sm:$0xff]  }
  0x7c   : > { %3301 = vmatpush3.bf16.msra.mxu0 %v3650_v13  ;;  %v3721_v13 = vld [vmem:[%s3920_s6 + $0x108] ss:$100 sps:$4 sm:$0x1f]  }
  0x7d   : > { %3329 = vmatpush3.bf16.msra.mxu1 %v3652_v15  ;;  %3302 = vmatprep.subr.bf16.mxu0 %v3653_v16  ;;  %v3723_v15 = vld [vmem:[%s3920_s6 + $0x114] ss:$100 sps:$4 sm:$0x1f]  }
  0x7e   : > { %3330 = vmatprep.subr.bf16.mxu1 %v3655_v18  ;;  %v3725_v16 = vld [vmem:[%s4496_s1 + $0x510] sm:$0xff]  }
  0x7f   : > { %v3727_v18 = vld [vmem:[%s4496_s1 + $0x5d0] sm:$0xff]  }
  0x80   : > { %3303 = vmatpush3.bf16.msra.mxu0 %v3654_v17  ;;  %v3726_v17 = vld [vmem:[%s3920_s6 + $0x110] ss:$100 sps:$4 sm:$0x1f]  }
  0x81   : > { %3331 = vmatpush3.bf16.msra.mxu1 %v3656_v19  ;;  %3304 = vmatprep.subr.bf16.mxu0 %v3657_v20  ;;  %v3728_v19 = vld [vmem:[%s4496_s1 + $0x590] sm:$0xff]   ;;  %v3729_v20 = vld [vmem:[%s4496_s1 + $0x558] sm:$0xff]  }
  0x82   : > { %3332 = vmatprep.subr.bf16.mxu1 %v3659_v22  ;;  %v3731_v22 = vld [vmem:[%s4496_s1 + $0x5d8] sm:$0xff]  }
  0x84   : > { %3305 = vmatpush3.bf16.msra.mxu0 %v3658_v21  ;;  %v3730_v21 = vld [vmem:[%s4496_s1 + $0x518] sm:$0xff]  }
  0x85   : > { %3333 = vmatpush3.bf16.msra.mxu1 %v3663_v25  ;;  %3346 = vmatprep.subr.bf16.mxu0 %v3664_v26  ;;  %v3734_v25 = vld [vmem:[%s4496_s1 + $0x520] sm:$0xff]  }
  0x86   : > { %3374 = vmatprep.subr.bf16.mxu1 %v3669_v30  ;;  %v3735_v26 = vld [vmem:[%s4496_s1 + $0x5e0] sm:$0xff]   ;;  %v3739_v30 = vld [vmem:[%s4496_s1 + $0x5e8] sm:$0xff]  }
  0x87   : > { %2430 = vmatmul.mubr.bf16.vlgmr.msra.gmra.mrb[24].mxu0 %v3660_v23  ;;  %v3732_v23 = vld [vmem:[%s4496_s1 + $0x598] sm:$0xff]  }
  0x88   : > { %3347 = vmatpush3.bf16.msra.mxu0 %v3668_v29  ;;  %2479 = vmatmul.mubr.bf16.vlgmr.msra.gmra.mrb[24].mxu1 %v3665_v27  ;;  %v3736_v27 = vld [vmem:[%s4496_s1 + $0x5a0] sm:$0xff]   ;;  %v3738_v29 = vld [vmem:[%s4496_s1 + $0x528] sm:$0xff]  }
  0x89   : > { %3375 = vmatpush3.bf16.msra.mxu1 %v3670_v31  ;;  %3348 = vmatprep.subr.bf16.mxu0 %v3671_v32  ;;  %v3740_v31 = vld [vmem:[%s4496_s1 + $0x5a8] sm:$0xff]   ;;  %v3741_v32 = vld [vmem:[%s4496_s1 + $0x570] sm:$0xff]  }
  0x8a   : > { %3376 = vmatprep.subr.bf16.mxu1 %v3673_v34  ;;  %2437 = vmatprep.mubr.bf16.mxu0 %v3674_v35  ;;  %v3743_v34 = vld [vmem:[%s4496_s1 + $0x5f0] sm:$0xff]  }
  0x8b   : > { %2486 = vmatprep.mubr.bf16.mxu1 %v3679_v39  ;;  %v3744_v35 = vld [vmem:[%s4496_s1 + $0x5b0] sm:$0xff]  }
  0x8c   : > { %3349 = vmatpush3.bf16.msra.mxu0 %v3672_v33  ;;  %v3742_v33 = vld [vmem:[%s4496_s1 + $0x530] sm:$0xff]  }
  0x8d   : > { %3377 = vmatpush3.bf16.msra.mxu1 %v3676_v36  ;;  %3350 = vmatprep.subr.bf16.mxu0 %v3678_v38  ;;  %v3745_v36 = vld [vmem:[%s4496_s1 + $0x578] sm:$0xff]   ;;  %v3748_v39 = vld [vmem:[%s3920_s6 + $0x50] ss:$100 sps:$4 sm:$0xff]  }
  0x8e   : > { %3378 = vmatprep.subr.bf16.mxu1 %v3683_v42  ;;  %v3747_v38 = vld [vmem:[%s4496_s1 + $0x5f8] sm:$0xff]   ;;  %v3752_v42 = vld [vmem:[%s4496_s1 + $0x600] sm:$0xff]  }
  0x8f   : > { %2438 = vmatmul.mubr.bf16.gmra.mrb[28].mxu0 %v3677_v37  ;;  %v3746_v37 = vld [vmem:[%s4496_s1 + $0x538] sm:$0xff]  }
  0x90   : > { %3351 = vmatpush3.bf16.msra.mxu0 %v3681_v40  ;;  %2487 = vmatmul.mubr.bf16.gmra.mrb[28].mxu1 %v3682_v41  ;;  %v3750_v40 = vld [vmem:[%s3920_s6 + $0x54] ss:$100 sps:$4 sm:$0xff]  }
  0x91   : > { %3379 = vmatpush3.bf16.msra.mxu1 %v3684_v43  ;;  %3352 = vmatprep.subr.bf16.mxu0 %v3685_v44  ;;  %v3751_v41 = vld [vmem:[%s4496_s1 + $0x5b8] sm:$0xff]  }
  0x92   : > { %3380 = vmatprep.subr.bf16.mxu1 %v3687_v46  ;;  %2527 = vmatprep.mubr.bf16.mxu0 %v3706_v0  ;;  %v3753_v43 = vld [vmem:[%s3920_s6 + $0x58] ss:$100 sps:$4 sm:$0xff]  }
  0x93   : > { %2576 = vmatprep.mubr.bf16.mxu1 %v3711_v4  ;;  %v3755_v44 = vld [vmem:[%s3920_s6 + $0x5c] ss:$100 sps:$4 sm:$0xff]  }
  0x94   : > { %3353 = vmatpush3.bf16.msra.mxu0 %v3686_v45  ;;  %v3756_v45 = vld [vmem:[%s4496_s1 + $0x608] sm:$0xff]   ;;  %v3757_v46 = vld [vmem:[%s3920_s6 + $0x11c] ss:$100 sps:$4 sm:$0x1f]  }
  0x95   : > { %3381 = vmatpush3.bf16.msra.mxu1 %v3688_v47  ;;  %3354 = vmatprep.subr.bf16.mxu0 %v3689_v48  ;;  %v3760_v47 = vld [vmem:[%s4496_s1 + $0x610] sm:$0xff]   ;;  %v3759_v48 = vld [vmem:[%s3920_s6 + $0x118] ss:$100 sps:$4 sm:$0x1f]  }
  0x96   : > { %3382 = vmatprep.subr.bf16.mxu1 %v3691_v50  ;;  %v3763_v50 = vld [vmem:[%s3920_s6 + $0x120] ss:$100 sps:$4 sm:$0x1f]  }
  0x98   : > { %3355 = vmatpush3.bf16.msra.mxu0 %v3690_v49  ;;  %v3761_v49 = vld [vmem:[%s3920_s6 + $0x124] ss:$100 sps:$4 sm:$0x1f]  }
  0x99   : > { %3383 = vmatpush3.bf16.msra.mxu1 %v3692_v51  ;;  %3356 = vmatprep.subr.bf16.mxu0 %v3693_v52  ;;  %v3764_v51 = vld [vmem:[%s4496_s1 + $0x618] sm:$0xff]   ;;  %v3765_v52 = vld [vmem:[%s4496_s1 + $0x620] sm:$0xff]  }
  0x9a   : > { %3384 = vmatprep.subr.bf16.mxu1 %v3695_v54  ;;  %v3766_v54 = vld [vmem:[%s4496_s1 + $0x628] sm:$0xff]  }
  0x9c   : > { %3357 = vmatpush3.bf16.msra.mxu0 %v3694_v53  ;;  %v3769_v53 = vld [vmem:[%s3920_s6 + $0x60] ss:$100 sps:$4 sm:$0xff]  }
  0x9d   : > { %3385 = vmatpush3.bf16.msra.mxu1 %v3696_v55  ;;  %3358 = vmatprep.subr.bf16.mxu0 %v3697_v56  ;;  %v3767_v55 = vld [vmem:[%s4496_s1 + $0x630] sm:$0xff]   ;;  %v3768_v56 = vld [vmem:[%s4496_s1 + $0x638] sm:$0xff]  }
  0x9e   : > { %3386 = vmatprep.subr.bf16.mxu1 %v3699_v58 }
  0xa0   : > { %3359 = vmatpush3.bf16.msra.mxu0 %v3698_v57 }
  0xa1   : > { %3387 = vmatpush3.bf16.msra.mxu1 %v3700_v59  ;;  %3360 = vmatprep.subr.bf16.mxu0 %v3701_v60 }
  0xa2   : > { %3388 = vmatprep.subr.bf16.mxu1 %v3703_v62 }
  0xa4   : > { %3361 = vmatpush3.bf16.msra.mxu0 %v3702_v61 }
  0xa5   : > { %3389 = vmatpush3.bf16.msra.mxu1 %v3707_v1  ;;  %3402 = vmatprep.subr.bf16.mxu0 %v3708_v2  ;;  %v3770_v2 = vld [vmem:[%s3920_s6 + $0x128] ss:$100 sps:$4 sm:$0x1f]  }
  0xa6   : > { %3430 = vmatprep.subr.bf16.mxu1 %v3713_v6 }
  0xa7   : > { %2528 = vmatmul.mubr.bf16.vlgmr.msra.gmra.mrb[32].mxu0 %v3704_v63 }
  0xa8   : > { %3403 = vmatpush3.bf16.msra.mxu0 %v3712_v5  ;;  %2577 = vmatmul.mubr.bf16.vlgmr.msra.gmra.mrb[32].mxu1 %v3709_v3 }
  0xa9   : > { %3431 = vmatpush3.bf16.msra.mxu1 %v3714_v7  ;;  %3404 = vmatprep.subr.bf16.mxu0 %v3715_v8 }
  0xaa   : > { %3432 = vmatprep.subr.bf16.mxu1 %v3717_v10  ;;  %2535 = vmatprep.mubr.bf16.mxu0 %v3718_v11 }
  0xab   : > { %2584 = vmatprep.mubr.bf16.mxu1 %v3723_v15 }
  0xac   : > { %3405 = vmatpush3.bf16.msra.mxu0 %v3716_v9 }
  0xad   : > { %3433 = vmatpush3.bf16.msra.mxu1 %v3720_v12  ;;  %3406 = vmatprep.subr.bf16.mxu0 %v3722_v14 }
  0xae   : > { %3434 = vmatprep.subr.bf16.mxu1 %v3727_v18 }
  0xaf   : > { %2536 = vmatmul.mubr.bf16.gmra.mrb[36].mxu0 %v3721_v13 }
  0xb0   : > { %3407 = vmatpush3.bf16.msra.mxu0 %v3725_v16  ;;  %2585 = vmatmul.mubr.bf16.gmra.mrb[36].mxu1 %v3726_v17 }
  0xb1   : > { %3435 = vmatpush3.bf16.msra.mxu1 %v3728_v19  ;;  %3408 = vmatprep.subr.bf16.mxu0 %v3729_v20 }
  0xb2   : > { %3436 = vmatprep.subr.bf16.mxu1 %v3731_v22  ;;  %2625 = vmatprep.mubr.bf16.mxu0 %v3750_v40 }
  0xb3   : > { %2674 = vmatprep.mubr.bf16.mxu1 %v3755_v44 }
  0xb4   : > { %3409 = vmatpush3.bf16.msra.mxu0 %v3730_v21 }
  0xb5   : > { %3437 = vmatpush3.bf16.msra.mxu1 %v3732_v23  ;;  %3410 = vmatprep.subr.bf16.mxu0 %v3733_v24 }
  0xb6   : > { %3438 = vmatprep.subr.bf16.mxu1 %v3735_v26 }
  0xb8   : > { %3411 = vmatpush3.bf16.msra.mxu0 %v3734_v25 }
  0xb9   : > { %3439 = vmatpush3.bf16.msra.mxu1 %v3736_v27  ;;  %3412 = vmatprep.subr.bf16.mxu0 %v3737_v28 }
  0xba   : > { %3440 = vmatprep.subr.bf16.mxu1 %v3739_v30 }
  0xbc   : > { %3413 = vmatpush3.bf16.msra.mxu0 %v3738_v29 }
  0xbd   : > { %3441 = vmatpush3.bf16.msra.mxu1 %v3740_v31  ;;  %3414 = vmatprep.subr.bf16.mxu0 %v3741_v32 }
  0xbe   : > { %3442 = vmatprep.subr.bf16.mxu1 %v3743_v34 }
  0xc0   : > { %3415 = vmatpush3.bf16.msra.mxu0 %v3742_v33 }
  0xc1   : > { %3443 = vmatpush3.bf16.msra.mxu1 %v3744_v35  ;;  %3416 = vmatprep.subr.bf16.mxu0 %v3745_v36 }
  0xc2   : > { %3444 = vmatprep.subr.bf16.mxu1 %v3747_v38 }
  0xc4   : > { %3417 = vmatpush3.bf16.msra.mxu0 %v3746_v37 }
  0xc5   : > { %3445 = vmatpush3.bf16.msra.mxu1 %v3751_v41  ;;  %3468 = vmatprep.subr.bf16.mxu0 %v3752_v42 }
  0xc7   : > { %2626 = vmatmul.mubr.bf16.vlgmr.msra.gmra.mrb[40].mxu0 %v3748_v39 }
  0xc8   : > { %3469 = vmatpush3.bf16.msra.mxu0 %v3752_v42  ;;  %2675 = vmatmul.mubr.bf16.vlgmr.msra.gmra.mrb[40].mxu1 %v3753_v43 }
  0xc9   : > { %3470 = vmatprep.subr.bf16.mxu0 %v3756_v45  ;;  %2633 = vmatprep.mubr.bf16.mxu0 %v3757_v46 }
  0xca   : > { %2682 = vmatprep.mubr.bf16.mxu1 %v3761_v49 }
  0xcc   : > { %3471 = vmatpush3.bf16.msra.mxu0 %v3756_v45 }
  0xcd   : > { %3472 = vmatprep.subr.bf16.mxu0 %v3760_v47 }
  0xcf   : > { %2634 = vmatmul.mubr.bf16.gmra.mrb[44].mxu0 %v3759_v48 }
  0xd0   : > { %3473 = vmatpush3.bf16.msra.mxu0 %v3760_v47  ;;  %2683 = vmatmul.mubr.bf16.gmra.mrb[44].mxu1 %v3763_v50 }
  0xd1   : > { %3474 = vmatprep.subr.bf16.mxu0 %v3764_v51  ;;  %3484 = vmatprep.mubr.bf16.mxu0 %v3769_v53 }
  0xd4   : > { %3475 = vmatpush3.bf16.msra.mxu0 %v3764_v51 }
  0xd5   : > { %3476 = vmatprep.subr.bf16.mxu0 %v3765_v52 }
  0xd8   : > { %3477 = vmatpush3.bf16.msra.mxu0 %v3765_v52 }
  0xd9   : > { %3478 = vmatprep.subr.bf16.mxu0 %v3766_v54 }
  0xdc   : > { %3479 = vmatpush3.bf16.msra.mxu0 %v3766_v54 }
  0xdd   : > { %3480 = vmatprep.subr.bf16.mxu0 %v3767_v55 }
  0xe0   : > { %3481 = vmatpush3.bf16.msra.mxu0 %v3767_v55 }
  0xe1   : > { %3482 = vmatprep.subr.bf16.mxu0 %v3768_v56 }
  0xe4   : > { %3483 = vmatpush3.bf16.msra.mxu0 %v3768_v56 }
  0xe7   : > { %3485 = vmatmul.mubr.bf16.vlgmr.msra.gmra.mrb[48].mxu0 %v3770_v2 }
  0xfa   : > { %v3138_v57 = vpop.f32.mrb[0].mxu0 }
  0xfb   : > { %v3166_v58 = vpop.f32.mrb[0].mxu1  ;;  %v3139_v59 = vpop.f32.mrb[1].mxu0 }
  0xfc   : > { %v3140_v60 = vadd.f32 %v3139_v59, %v3138_v57  ;;  %v3167_v61 = vpop.f32.mrb[1].mxu1  ;;  %v3141_v62 = vpop.f32.mrb[2].mxu0 }
  0xfd   : > { %v3168_v63 = vadd.f32 %v3167_v61, %v3166_v58  ;;  %v3169_v0 = vpop.f32.mrb[2].mxu1  ;;  %v3142_v1 = vpop.f32.mrb[3].mxu0 }
  0xfe   : > { %v3143_v3 = vadd.f32 %v3142_v1, %v3141_v62  ;;  %v3170_v4 = vpop.f32.mrb[3].mxu1 }
  0xff   : > { %v2187_v5 = vadd.f32 %v3168_v63, %v3140_v60  ;;  %v3171_v6 = vadd.f32 %v3170_v4, %v3169_v0 }
 0x101   : > { %v2190_v7 = vadd.f32 %v3171_v6, %v3143_v3 }
 0x102   : > { %v3144_v8 = vpop.f32.mrb[4].mxu0 }
 0x103   : > { %v3172_v9 = vpop.f32.mrb[4].mxu1  ;;  %v3145_v10 = vpop.f32.mrb[5].mxu0 }
 0x104   : > { %v3173_v11 = vpop.f32.mrb[5].mxu1  ;;  %v3146_v12 = vadd.f32 %v3145_v10, %v3144_v8  ;;  %v3147_v14 = vpop.f32.mrb[6].mxu0 }
 0x105   : > { %v3174_v13 = vadd.f32 %v3173_v11, %v3172_v9  ;;  %v3175_v15 = vpop.f32.mrb[6].mxu1  ;;  %v3148_v16 = vpop.f32.mrb[7].mxu0 }
 0x106   : > { %v3176_v17 = vpop.f32.mrb[7].mxu1  ;;  %v3149_v19 = vadd.f32 %v3148_v16, %v3147_v14 }
 0x107   : > { %v2195_v18 = vadd.f32 %v3174_v13, %v3146_v12  ;;  %v3177_v20 = vadd.f32 %v3176_v17, %v3175_v15 }
 0x109   : > { %v2198_v21 = vadd.f32 %v3177_v20, %v3149_v19 }
 0x11a   : > { %v3194_v22 = vpop.f32.mrb[8].mxu0 }
 0x11b   : > { %v3195_v23 = vpop.f32.mrb[9].mxu0  ;;  %v3222_v28 = vpop.f32.mrb[8].mxu1 }
 0x11c   : > { %v3196_v24 = vadd.f32 %v3195_v23, %v3194_v22  ;;  %v3197_v25 = vpop.f32.mrb[10].mxu0  ;;  %v3223_v30 = vpop.f32.mrb[9].mxu1 }
 0x11d   : > { %v3198_v26 = vpop.f32.mrb[11].mxu0  ;;  %v3224_v32 = vadd.f32 %v3223_v30, %v3222_v28  ;;  %v3225_v33 = vpop.f32.mrb[10].mxu1 }
 0x11e   : > { %v2236_v27 = vadd.f32 %v3196_v24, %v2187_v5  ;;  %v3199_v29 = vadd.f32 %v3198_v26, %v3197_v25  ;;  %v3226_v34 = vpop.f32.mrb[11].mxu1 }
 0x11f   : > { %v3227_v36 = vadd.f32 %v3226_v34, %v3225_v33 }
 0x120   : > { %v2239_v31 = vadd.f32 %v3199_v29, %v2190_v7  ;;  %v2285_v35 = vadd.f32 %v3224_v32, %v2236_v27 }
 0x122   : > { %v2288_v37 = vadd.f32 %v3227_v36, %v2239_v31  ;;  %v3200_v38 = vpop.f32.mrb[12].mxu0 }
 0x123   : > { %v3201_v39 = vpop.f32.mrb[13].mxu0  ;;  %v3228_v44 = vpop.f32.mrb[12].mxu1 }
 0x124   : > { %v3202_v40 = vadd.f32 %v3201_v39, %v3200_v38  ;;  %v3203_v41 = vpop.f32.mrb[14].mxu0  ;;  %v3229_v46 = vpop.f32.mrb[13].mxu1 }
 0x125   : > { %v3204_v42 = vpop.f32.mrb[15].mxu0  ;;  %v3230_v48 = vadd.f32 %v3229_v46, %v3228_v44  ;;  %v3231_v49 = vpop.f32.mrb[14].mxu1 }
 0x126   : > { %v2244_v43 = vadd.f32 %v3202_v40, %v2195_v18  ;;  %v3205_v45 = vadd.f32 %v3204_v42, %v3203_v41  ;;  %v3232_v50 = vpop.f32.mrb[15].mxu1 }
 0x127   : > { %v3233_v52 = vadd.f32 %v3232_v50, %v3231_v49 }
 0x128   : > { %v2247_v47 = vadd.f32 %v3205_v45, %v2198_v21  ;;  %v2293_v51 = vadd.f32 %v3230_v48, %v2244_v43 }
 0x12a   : > { %v2296_v53 = vadd.f32 %v3233_v52, %v2247_v47 }
 0x13a   : > { %v3250_v54 = vpop.f32.mrb[16].mxu0 }
 0x13b   : > { %v3251_v55 = vpop.f32.mrb[17].mxu0  ;;  %v3278_v58 = vpop.f32.mrb[16].mxu1 }
 0x13c   : > { %v3252_v56 = vadd.f32 %v3251_v55, %v3250_v54  ;;  %v3253_v57 = vpop.f32.mrb[18].mxu0  ;;  %v3279_v62 = vpop.f32.mrb[17].mxu1 }
 0x13d   : > { %v3254_v59 = vpop.f32.mrb[19].mxu0  ;;  %v3280_v63 = vadd.f32 %v3279_v62, %v3278_v58  ;;  %v3281_v0 = vpop.f32.mrb[18].mxu1 }
 0x13e   : > { %v2334_v60 = vadd.f32 %v3252_v56, %v2285_v35  ;;  %v3255_v61 = vadd.f32 %v3254_v59, %v3253_v57  ;;  %v3282_v2 = vpop.f32.mrb[19].mxu1 }
 0x13f   : > { %v3283_v4 = vadd.f32 %v3282_v2, %v3281_v0 }
 0x140   : > { %v2337_v1 = vadd.f32 %v3255_v61, %v2288_v37  ;;  %v2383_v3 = vadd.f32 %v3280_v63, %v2334_v60 }
 0x142   : > { %v2386_v5 = vadd.f32 %v3283_v4, %v2337_v1  ;;  %v3256_v6 = vpop.f32.mrb[20].mxu0 }
 0x143   : > { %v3257_v7 = vpop.f32.mrb[21].mxu0  ;;  %v3284_v10 = vpop.f32.mrb[20].mxu1 }
 0x144   : > { %v3258_v8 = vadd.f32 %v3257_v7, %v3256_v6  ;;  %v3259_v9 = vpop.f32.mrb[22].mxu0  ;;  %v3285_v14 = vpop.f32.mrb[21].mxu1 }
 0x145   : > { %v3260_v11 = vpop.f32.mrb[23].mxu0  ;;  %v3286_v15 = vadd.f32 %v3285_v14, %v3284_v10  ;;  %v3287_v16 = vpop.f32.mrb[22].mxu1 }
 0x146   : > { %v2342_v12 = vadd.f32 %v3258_v8, %v2293_v51  ;;  %v3261_v13 = vadd.f32 %v3260_v11, %v3259_v9  ;;  %v3288_v18 = vpop.f32.mrb[23].mxu1 }
 0x147   : > { %v3289_v20 = vadd.f32 %v3288_v18, %v3287_v16 }
 0x148   : > { %v2345_v17 = vadd.f32 %v3261_v13, %v2296_v53  ;;  %v2391_v19 = vadd.f32 %v3286_v15, %v2342_v12 }
 0x14a   : > { %v2394_v21 = vadd.f32 %v3289_v20, %v2345_v17 }
 0x15a   : > { %v3306_v22 = vpop.f32.mrb[24].mxu0 }
 0x15b   : > { %v3307_v23 = vpop.f32.mrb[25].mxu0  ;;  %v3334_v26 = vpop.f32.mrb[24].mxu1 }
 0x15c   : > { %v3308_v24 = vadd.f32 %v3307_v23, %v3306_v22  ;;  %v3309_v25 = vpop.f32.mrb[26].mxu0  ;;  %v3335_v30 = vpop.f32.mrb[25].mxu1 }
 0x15d   : > { %v3310_v27 = vpop.f32.mrb[27].mxu0  ;;  %v3336_v31 = vadd.f32 %v3335_v30, %v3334_v26  ;;  %v3337_v32 = vpop.f32.mrb[26].mxu1 }
 0x15e   : > { %v2432_v28 = vadd.f32 %v3308_v24, %v2383_v3  ;;  %v3311_v29 = vadd.f32 %v3310_v27, %v3309_v25  ;;  %v3338_v34 = vpop.f32.mrb[27].mxu1 }
 0x15f   : > { %v3339_v36 = vadd.f32 %v3338_v34, %v3337_v32 }
 0x160   : > { %v2435_v33 = vadd.f32 %v3311_v29, %v2386_v5  ;;  %v2481_v35 = vadd.f32 %v3336_v31, %v2432_v28 }
 0x162   : > { %v2484_v37 = vadd.f32 %v3339_v36, %v2435_v33  ;;  %v3312_v38 = vpop.f32.mrb[28].mxu0 }
 0x163   : > { %v3313_v39 = vpop.f32.mrb[29].mxu0  ;;  %v3340_v42 = vpop.f32.mrb[28].mxu1 }
 0x164   : > { %v3314_v40 = vadd.f32 %v3313_v39, %v3312_v38  ;;  %v3315_v41 = vpop.f32.mrb[30].mxu0  ;;  %v3341_v46 = vpop.f32.mrb[29].mxu1 }
 0x165   : > { %v3316_v43 = vpop.f32.mrb[31].mxu0  ;;  %v3342_v47 = vadd.f32 %v3341_v46, %v3340_v42  ;;  %v3343_v48 = vpop.f32.mrb[30].mxu1 }
 0x166   : > { %v2440_v44 = vadd.f32 %v3314_v40, %v2391_v19  ;;  %v3317_v45 = vadd.f32 %v3316_v43, %v3315_v41  ;;  %v3344_v50 = vpop.f32.mrb[31].mxu1 }
 0x167   : > { %v3345_v52 = vadd.f32 %v3344_v50, %v3343_v48 }
 0x168   : > { %v2443_v49 = vadd.f32 %v3317_v45, %v2394_v21  ;;  %v2489_v51 = vadd.f32 %v3342_v47, %v2440_v44 }
 0x16a   : > { %v2492_v53 = vadd.f32 %v3345_v52, %v2443_v49 }
 0x17a   : > { %v3362_v54 = vpop.f32.mrb[32].mxu0 }
 0x17b   : > { %v3363_v55 = vpop.f32.mrb[33].mxu0  ;;  %v3390_v60 = vpop.f32.mrb[32].mxu1 }
 0x17c   : > { %v3364_v56 = vadd.f32 %v3363_v55, %v3362_v54  ;;  %v3365_v57 = vpop.f32.mrb[34].mxu0  ;;  %v3391_v62 = vpop.f32.mrb[33].mxu1  ;;  %v3104_v55 = vld [vmem:[%s4497_s2] ss:$0 sm:$0xff] }
 0x17d   : > { %v3366_v58 = vpop.f32.mrb[35].mxu0  ;;  %v3392_v0 = vadd.f32 %v3391_v62, %v3390_v60  ;;  %v3393_v1 = vpop.f32.mrb[34].mxu1 }
 0x17e   : > { %v2530_v59 = vadd.f32 %v3364_v56, %v2481_v35  ;;  %v3367_v61 = vadd.f32 %v3366_v58, %v3365_v57  ;;  %v3394_v2 = vpop.f32.mrb[35].mxu1  ;;  %v3105_v58 = vld [vmem:[%s4498_s3] ss:$0 sm:$0xff] }
 0x17f   : > { %v3395_v4 = vadd.f32 %v3394_v2, %v3393_v1 }
 0x180   : > { %v2533_v63 = vadd.f32 %v3367_v61, %v2484_v37  ;;  %v2579_v3 = vadd.f32 %v3392_v0, %v2530_v59 }
 0x182   : > { %v2582_v5 = vadd.f32 %v3395_v4, %v2533_v63  ;;  %v3368_v6 = vpop.f32.mrb[36].mxu0 }
 0x183   : > { %v3369_v7 = vpop.f32.mrb[37].mxu0  ;;  %v3396_v12 = vpop.f32.mrb[36].mxu1 }
 0x184   : > { %v3370_v8 = vadd.f32 %v3369_v7, %v3368_v6  ;;  %v3371_v9 = vpop.f32.mrb[38].mxu0  ;;  %v3397_v14 = vpop.f32.mrb[37].mxu1 }
 0x185   : > { %v3372_v10 = vpop.f32.mrb[39].mxu0  ;;  %v3398_v16 = vadd.f32 %v3397_v14, %v3396_v12  ;;  %v3399_v17 = vpop.f32.mrb[38].mxu1  ;;  %v2788_v12 = vld [vmem:[%s197_s8 + $0xc] sm:$0x1] }
 0x186   : > { %v2538_v11 = vadd.f32 %v3370_v8, %v2489_v51  ;;  %v3373_v13 = vadd.f32 %v3372_v10, %v3371_v9  ;;  %v3400_v18 = vpop.f32.mrb[39].mxu1 }
 0x187   : > { %v3401_v20 = vadd.f32 %v3400_v18, %v3399_v17 }
 0x188   : > { %v2541_v15 = vadd.f32 %v3373_v13, %v2492_v53  ;;  %v2587_v19 = vadd.f32 %v3398_v16, %v2538_v11 }
 0x18a   : > { %v2590_v21 = vadd.f32 %v3401_v20, %v2541_v15 }
 0x19a   : > { %v3418_v22 = vpop.f32.mrb[40].mxu0 }
 0x19b   : > { %v3419_v23 = vpop.f32.mrb[41].mxu0  ;;  %v3446_v26 = vpop.f32.mrb[40].mxu1 }
 0x19c   : > { %v3420_v24 = vadd.f32 %v3419_v23, %v3418_v22  ;;  %v3421_v25 = vpop.f32.mrb[42].mxu0  ;;  %v3447_v30 = vpop.f32.mrb[41].mxu1 }
 0x19d   : > { %v3422_v27 = vpop.f32.mrb[43].mxu0  ;;  %v3448_v31 = vadd.f32 %v3447_v30, %v3446_v26  ;;  %v3449_v32 = vpop.f32.mrb[42].mxu1 }
 0x19e   : > { %v2628_v28 = vadd.f32 %v3420_v24, %v2579_v3  ;;  %v3423_v29 = vadd.f32 %v3422_v27, %v3421_v25  ;;  %v3450_v34 = vpop.f32.mrb[43].mxu1 }
 0x19f   : > { %v3451_v35 = vadd.f32 %v3450_v34, %v3449_v32 }
 0x1a0   : > { %v2631_v33 = vadd.f32 %v3423_v29, %v2582_v5  ;;  %v2677_v36 = vadd.f32 %v3448_v31, %v2628_v28 }
 0x1a2   : > { %v3424_v37 = vpop.f32.mrb[44].mxu0  ;;  %v2680_v39 = vadd.f32 %v3451_v35, %v2631_v33 }
 0x1a3   : > { %v3425_v38 = vpop.f32.mrb[45].mxu0  ;;  %v3452_v42 = vpop.f32.mrb[44].mxu1 }
 0x1a4   : > { %v3426_v40 = vadd.f32 %v3425_v38, %v3424_v37  ;;  %v3427_v41 = vpop.f32.mrb[46].mxu0  ;;  %v3453_v46 = vpop.f32.mrb[45].mxu1 }
 0x1a5   : > { %v3428_v43 = vpop.f32.mrb[47].mxu0  ;;  %v3454_v47 = vadd.f32 %v3453_v46, %v3452_v42  ;;  %v3455_v48 = vpop.f32.mrb[46].mxu1 }
 0x1a6   : > { %v2636_v44 = vadd.f32 %v3426_v40, %v2587_v19  ;;  %v3429_v45 = vadd.f32 %v3428_v43, %v3427_v41  ;;  %v3456_v50 = vpop.f32.mrb[47].mxu1 }
 0x1a7   : > { %v3457_v51 = vadd.f32 %v3456_v50, %v3455_v48 }
 0x1a8   : > { %v2639_v49 = vadd.f32 %v3429_v45, %v2590_v21  ;;  %v2685_v52 = vadd.f32 %v3454_v47, %v2636_v44 }
 0x1aa   : > { %v2688_v53 = vadd.f32 %v3457_v51, %v2639_v49 }
 0x1ba   : > { %v3486_v54 = vpop.f32.mrb[48].mxu0 }
 0x1bb   : > { %v2734_v56 = vadd.f32 %v3486_v54, %v2685_v52  ;;  %v2725_v57 = vpop.f32.mrb[49].mxu0 }
 0x1bc   : > { %v2726_v59 = vadd.f32 %v2725_v57, %v2677_v36  ;;  %v3487_v60 = vpop.f32.mrb[50].mxu0 }
 0x1bd   : > { %v2749_v61 = vmul.f32 %v3104_v55, %v2734_v56  ;;  %v2737_v62 = vadd.f32 %v3487_v60, %v2688_v53  ;;  %v2728_v63 = vpop.f32.mrb[51].mxu0 }
 0x1be   : > { %v2747_v0 = vmul.f32 %v3104_v55, %v2726_v59  ;;  %v2729_v1 = vadd.f32 %v2728_v63, %v2680_v39 }
 0x1bf   : > { %v2760_v2 = vadd.f32 %v3105_v58, %v2749_v61  ;;  %v2750_v3 = vmul.f32 %v3104_v55, %v2737_v62 }
 0x1c0   : > { %v2758_v4 = vadd.f32 %v3105_v58, %v2747_v0  ;;  %v2748_v5 = vmul.f32 %v3104_v55, %v2729_v1 }
 0x1c1   : > { %3771 = vtanh.f32 %v2760_v2  ;;  %v2761_v6 = vadd.f32 %v3105_v58, %v2750_v3 }
 0x1c2   : > { %3773 = vtanh.f32 %v2758_v4  ;;  %v2759_v7 = vadd.f32 %v3105_v58, %v2748_v5 }
 0x1c3   : > { %3775 = vtanh.f32 %v2761_v6 }
 0x1c4   : > { %3777 = vtanh.f32 %v2759_v7 }
 0x1cb   : > { %v3772_v8 = vpop.eup %3771 }
 0x1cc   : > { %v3774_v9 = vpop.eup %3773  ;;  %v3115_v10 = vpack.c.bf16 %v3772_v8, %v3772_v8 }
 0x1cd   : > { %v3776_v11 = vpop.eup %3775 }
 0x1ce   : > { %v3778_v13 = vpop.eup %3777  ;;  %2784 = vst [vmem:[%s197_s8 + $0x8] sm:$0xf] %v3115_v10  ;;  %v3116_v14 = vpack.c.bf16 %v3776_v11, %v3776_v11 }
 0x1cf   : > { %v3120_v15 = vpack.c.bf16 %v3778_v13, %v3774_v9 }
 0x1d0   : > { %v2789_v16 = vsel %vm2787_vm2, %v3116_v14, %v2788_v12 }
 0x1d1   : > { %2790 = vst [vmem:[%s197_s8 + $0xc] sm:$0x1] %v2789_v16  ;;  %3121 = vst [vmem:[%s197_s8] sm:$0xff] %v3120_v15  }
 0x1d2 PF: > { %s14_s15 = sadd.s32 1, %s3785_s15  }
 0x1d3   : > { %p11_p4 = scmp.ge.s32.totalorder %s14_s15, 4  }
 0x1d5   :  { %13 = sbr.rel (!%p11_p4) target bundleno = 1 (0x1), region = 66 }

// kernel: discriminator_forward.5
= control target key start
LH: loop header
LB: loop body
LE: loop exit
PB: predicated region body
PF: predicated region fallthrough
CT: control target
= control target key end

     0   :  { %v3228_v21 = vmov 1966171168   ;;  %v440_v23 = vlaneseq  ;;  %vm3230_vm0 = vmmov 0   ;;  %s3967_s1 = inlined_call_operand.vmem [shape: bf16[3200,128], index: 1, kind: input, shape index: {}]   ;;  %s3968_s0 = inlined_call_operand.vmem [shape: bf16[2,3200], index: 0, kind: input, shape index: {}]   ;;  %s3969_s2 = inlined_call_operand.vmem [shape: f32[1,128], index: 2, kind: input, shape index: {}]   ;;  %s3970_s3 = inlined_call_operand.vmem [shape: f32[128,128], index: 3, kind: input, shape index: {}]   ;;  %s3971_s4 = inlined_call_operand.vmem [shape: f32[1,128], index: 4, kind: input, shape index: {}]   ;;  %s3972_s5 = inlined_call_operand.vmem [shape: f32[2,128], index: 5, kind: output, shape index: {}]  }
   0x1   :  { %v3021_v0 = vld [vmem:[%s3967_s1 + $0x40] sm:$0xff]   ;;  %v3025_v4 = vld [vmem:[%s3967_s1 + $0x48] sm:$0xff]   ;;  %v3029_v8 = vld [vmem:[%s3967_s1 + $0x50] sm:$0xff]   ;;  %v438_v22 = vunpack.c.l.s4 %v3228_v21 }
   0x2   :  { %v3022_v1 = vld [vmem:[%s3967_s1] sm:$0xff]   ;;  %2648 = vmatprep.subr.bf16.mxu0 %v3021_v0  ;;  %v3026_v5 = vld [vmem:[%s3967_s1 + $0x8] sm:$0xff]   ;;  %v3030_v9 = vld [vmem:[%s3967_s1 + $0x10] sm:$0xff]   ;;  %v441_v29 = vshrl.u32 %v440_v23, 7 }
   0x3   :  { %v3023_v2 = vld [vmem:[%s3967_s1 + $0xc0] sm:$0xff]   ;;  %2649 = vmatpush3.bf16.msra.mxu0 %v3022_v1  ;;  %v3027_v6 = vld [vmem:[%s3967_s1 + $0xc8] sm:$0xff]   ;;  %v3031_v10 = vld [vmem:[%s3967_s1 + $0xd0] sm:$0xff]   ;;  %v439_v28 = vunpack.c.0.s8 %v438_v22 }
   0x4   :  { %v3024_v3 = vld [vmem:[%s3967_s1 + $0x80] sm:$0xff]   ;;  %2670 = vmatprep.subr.bf16.mxu1 %v3023_v2  ;;  %2650 = vmatprep.subr.bf16.mxu0 %v3025_v4  ;;  %v3028_v7 = vld [vmem:[%s3967_s1 + $0x88] sm:$0xff]   ;;  %v3032_v11 = vld [vmem:[%s3967_s1 + $0x90] sm:$0xff]  }
   0x5   :  { %2671 = vmatpush3.bf16.msra.mxu1 %v3024_v3  ;;  %v3033_v12 = vld [vmem:[%s3967_s1 + $0x58] sm:$0xff]   ;;  %v3037_v16 = vld [vmem:[%s3967_s1 + $0x60] sm:$0xff]   ;;  %v3041_v20 = vld [vmem:[%s3967_s1 + $0x68] sm:$0xff]   ;;  %v3349_v34 = vsub.s32 %v439_v28, %v441_v29 }
   0x6   :  { %2672 = vmatprep.subr.bf16.mxu1 %v3027_v6  ;;  %v3034_v13 = vld [vmem:[%s3967_s1 + $0x18] sm:$0xff]   ;;  %v3038_v17 = vld [vmem:[%s3967_s1 + $0x20] sm:$0xff]   ;;  %v3042_v24 = vld [vmem:[%s3967_s1 + $0x28] sm:$0xff]  }
   0x7   :  { %2651 = vmatpush3.bf16.msra.mxu0 %v3026_v5  ;;  %v3035_v14 = vld [vmem:[%s3967_s1 + $0xd8] sm:$0xff]   ;;  %v3039_v18 = vld [vmem:[%s3967_s1 + $0xe0] sm:$0xff]   ;;  %v3043_v25 = vld [vmem:[%s3967_s1 + $0xe8] sm:$0xff]  }
   0x8   :  { %2652 = vmatprep.subr.bf16.mxu0 %v3029_v8  ;;  %v3036_v15 = vld [vmem:[%s3967_s1 + $0x98] sm:$0xff]   ;;  %v3040_v19 = vld [vmem:[%s3967_s1 + $0xa0] sm:$0xff]   ;;  %v3044_v26 = vld [vmem:[%s3967_s1 + $0xa8] sm:$0xff]  }
   0x9   :  { %2673 = vmatpush3.bf16.msra.mxu1 %v3028_v7  ;;  %v3045_v27 = vld [vmem:[%s3967_s1 + $0x70] sm:$0xff]   ;;  %v3049_v33 = vld [vmem:[%s3967_s1 + $0x78] sm:$0xff]   ;;  %v21_v37 = vld [vmem:[%s3968_s0] sm:$0xff] }
   0xa   :  { %2674 = vmatprep.subr.bf16.mxu1 %v3031_v10  ;;  %v3046_v30 = vld [vmem:[%s3967_s1 + $0x30] sm:$0xff]   ;;  %v3050_v35 = vld [vmem:[%s3967_s1 + $0x38] sm:$0xff]   ;;  %v436_v38 = vcombine.high %v21_v37, %v21_v37  ;;  %v443_v39 = vrot.slane %v21_v37, %v3349_v34  ;;  %v3054_v41 = vld [vmem:[%s3967_s1 + $0x140] sm:$0xff]  }
   0xb   :  { %2653 = vmatpush3.bf16.msra.mxu0 %v3030_v9  ;;  %v3047_v31 = vld [vmem:[%s3967_s1 + $0xf0] sm:$0xff]   ;;  %v3051_v36 = vld [vmem:[%s3967_s1 + $0xf8] sm:$0xff]   ;;  %v3056_v45 = vld [vmem:[%s3967_s1 + $0x1c0] sm:$0xff]  }
   0xc   :  { %2654 = vmatprep.subr.bf16.mxu0 %v3033_v12  ;;  %v3048_v32 = vld [vmem:[%s3967_s1 + $0xb0] sm:$0xff]   ;;  %v3053_v40 = vld [vmem:[%s3967_s1 + $0xb8] sm:$0xff]   ;;  %v451_v42 = vcombine.high %v443_v39, %v443_v39  ;;  %v459_v43 = vrot.slane %v443_v39, %v3349_v34  ;;  %v3369_v44 = vrot.slane %v436_v38, %v3349_v34  ;;  %v3055_v47 = vld [vmem:[%s3967_s1 + $0x100] sm:$0xff]  }
   0xd   :  { %2675 = vmatpush3.bf16.msra.mxu1 %v3032_v11  ;;  %v3058_v50 = vld [vmem:[%s3967_s1 + $0x148] sm:$0xff]   ;;  %v3057_v52 = vld [vmem:[%s3967_s1 + $0x180] sm:$0xff]   ;;  %v3062_v57 = vld [vmem:[%s3967_s1 + $0x150] sm:$0xff]  }
   0xe   :  { %2676 = vmatprep.subr.bf16.mxu1 %v3035_v14  ;;  %v473_v46 = vrot.slane %v451_v42, %v3349_v34  ;;  %v452_v48 = vcombine.high %v3369_v44, %v3369_v44  ;;  %v481_v49 = vcombine.high %v459_v43, %v459_v43  ;;  %v3060_v54 = vld [vmem:[%s3967_s1 + $0x1c8] sm:$0xff]   ;;  %v3064_v59 = vld [vmem:[%s3967_s1 + $0x1d0] sm:$0xff]   ;;  %v3066_v61 = vld [vmem:[%s3967_s1 + $0x158] sm:$0xff]  }
   0xf   :  { %2655 = vmatpush3.bf16.msra.mxu0 %v3034_v13  ;;  %v3059_v55 = vld [vmem:[%s3967_s1 + $0x108] sm:$0xff]   ;;  %v3063_v60 = vld [vmem:[%s3967_s1 + $0x110] sm:$0xff]   ;;  %v3068_v63 = vld [vmem:[%s3967_s1 + $0x1d8] sm:$0xff]  }
  0x10   :  { %2656 = vmatprep.subr.bf16.mxu0 %v3037_v16  ;;  %1854 = vmatprep.mubr.bf16.mxu0 %v473_v46  ;;  %v483_v51 = vcombine.high %v473_v46, %v473_v46  ;;  %v480_v53 = vrot.slane %v452_v48, %v3349_v34  ;;  %v3061_v58 = vld [vmem:[%s3967_s1 + $0x188] sm:$0xff]   ;;  %v3065_v62 = vld [vmem:[%s3967_s1 + $0x190] sm:$0xff]   ;;  %v3067_v0 = vld [vmem:[%s3967_s1 + $0x118] sm:$0xff]  }
  0x11   :  { %2677 = vmatpush3.bf16.msra.mxu1 %v3036_v15  ;;  %v3070_v1 = vld [vmem:[%s3967_s1 + $0x160] sm:$0xff]   ;;  %v3069_v2 = vld [vmem:[%s3967_s1 + $0x198] sm:$0xff]   ;;  %v3074_v5 = vld [vmem:[%s3967_s1 + $0x168] sm:$0xff]  }
  0x12   :  { %2678 = vmatprep.subr.bf16.mxu1 %v3039_v18  ;;  %1894 = vmatprep.mubr.bf16.mxu1 %v483_v51  ;;  %v484_v56 = vcombine.high %v480_v53, %v480_v53  ;;  %v3072_v3 = vld [vmem:[%s3967_s1 + $0x1e0] sm:$0xff]   ;;  %v3076_v7 = vld [vmem:[%s3967_s1 + $0x1e8] sm:$0xff]   ;;  %v3078_v9 = vld [vmem:[%s3967_s1 + $0x170] sm:$0xff]  }
  0x13   :  { %2657 = vmatpush3.bf16.msra.mxu0 %v3038_v17  ;;  %v3071_v4 = vld [vmem:[%s3967_s1 + $0x120] sm:$0xff]   ;;  %v3075_v8 = vld [vmem:[%s3967_s1 + $0x128] sm:$0xff]   ;;  %v3080_v11 = vld [vmem:[%s3967_s1 + $0x1f0] sm:$0xff]   ;;  %v466_v17 = vrot.slane %v3369_v44, %v3349_v34 }
  0x14   :  { %2658 = vmatprep.subr.bf16.mxu0 %v3041_v20  ;;  %v3073_v6 = vld [vmem:[%s3967_s1 + $0x1a0] sm:$0xff]   ;;  %v3077_v10 = vld [vmem:[%s3967_s1 + $0x1a8] sm:$0xff]   ;;  %v3079_v12 = vld [vmem:[%s3967_s1 + $0x130] sm:$0xff]  }
  0x15   :  { %2679 = vmatpush3.bf16.msra.mxu1 %v3040_v19  ;;  %v3082_v13 = vld [vmem:[%s3967_s1 + $0x178] sm:$0xff]   ;;  %v3081_v14 = vld [vmem:[%s3967_s1 + $0x1b0] sm:$0xff]   ;;  %v3086_v18 = vld [vmem:[%s3967_s1 + $0x240] sm:$0xff]   ;;  %v482_v22 = vcombine.high %v466_v17, %v466_v17 }
  0x16   :  { %2680 = vmatprep.subr.bf16.mxu1 %v3043_v25  ;;  %v3084_v15 = vld [vmem:[%s3967_s1 + $0x1f8] sm:$0xff]   ;;  %v3088_v20 = vld [vmem:[%s3967_s1 + $0x2c0] sm:$0xff]   ;;  %v3090_v23 = vld [vmem:[%s3967_s1 + $0x248] sm:$0xff]  }
  0x17   :  { %2659 = vmatpush3.bf16.msra.mxu0 %v3042_v24  ;;  %v3083_v16 = vld [vmem:[%s3967_s1 + $0x138] sm:$0xff]   ;;  %v3087_v21 = vld [vmem:[%s3967_s1 + $0x200] sm:$0xff]   ;;  %v3092_v25 = vld [vmem:[%s3967_s1 + $0x2c8] sm:$0xff]  }
  0x18   :  { %2660 = vmatprep.subr.bf16.mxu0 %v3045_v27  ;;  %v3085_v19 = vld [vmem:[%s3967_s1 + $0x1b8] sm:$0xff]   ;;  %v3089_v24 = vld [vmem:[%s3967_s1 + $0x280] sm:$0xff]   ;;  %v3094_v27 = vld [vmem:[%s3967_s1 + $0x250] sm:$0xff]  }
  0x19   :  { %2681 = vmatpush3.bf16.msra.mxu1 %v3044_v26  ;;  %v3091_v26 = vld [vmem:[%s3967_s1 + $0x208] sm:$0xff]   ;;  %v3096_v29 = vld [vmem:[%s3967_s1 + $0x2d0] sm:$0xff]   ;;  %v3101_v37 = vld [vmem:[%s3967_s1 + $0x298] sm:$0xff]  }
  0x1a   :  { %2682 = vmatprep.subr.bf16.mxu1 %v3047_v31  ;;  %v3093_v28 = vld [vmem:[%s3967_s1 + $0x288] sm:$0xff]   ;;  %v3098_v31 = vld [vmem:[%s3967_s1 + $0x258] sm:$0xff]   ;;  %v3104_v38 = vld [vmem:[%s3967_s1 + $0x2e0] sm:$0xff]  }
  0x1b   :  { %2661 = vmatpush3.bf16.msra.mxu0 %v3046_v30  ;;  %v3095_v30 = vld [vmem:[%s3967_s1 + $0x210] sm:$0xff]   ;;  %v3103_v39 = vld [vmem:[%s3967_s1 + $0x220] sm:$0xff]   ;;  %v3108_v42 = vld [vmem:[%s3967_s1 + $0x2e8] sm:$0xff]  }
  0x1c   :  { %2662 = vmatprep.subr.bf16.mxu0 %v3049_v33  ;;  %v3100_v33 = vld [vmem:[%s3967_s1 + $0x2d8] sm:$0xff]   ;;  %v3110_v44 = vld [vmem:[%s3967_s1 + $0x270] sm:$0xff]   ;;  %v22_v51 = vld [vmem:[%s3968_s0 + $0x8] sm:$0xff] }
  0x1d   :  { %2683 = vmatpush3.bf16.msra.mxu1 %v3048_v32  ;;  %v3097_v32 = vld [vmem:[%s3967_s1 + $0x290] sm:$0xff]   ;;  %v3114_v48 = vld [vmem:[%s3967_s1 + $0x278] sm:$0xff]  }
  0x1e   :  { %2684 = vmatprep.subr.bf16.mxu1 %v3051_v36  ;;  %v3102_v36 = vld [vmem:[%s3967_s1 + $0x260] sm:$0xff]   ;;  %v3112_v46 = vld [vmem:[%s3967_s1 + $0x2f0] sm:$0xff]  }
  0x1f   :  { %2663 = vmatpush3.bf16.msra.mxu0 %v3050_v35  ;;  %v3099_v35 = vld [vmem:[%s3967_s1 + $0x218] sm:$0xff]  }
  0x20   :  { %2692 = vmatprep.subr.bf16.mxu0 %v3054_v41  ;;  %v3105_v41 = vld [vmem:[%s3967_s1 + $0x2a0] sm:$0xff]  }
  0x21   :  { %2685 = vmatpush3.bf16.msra.mxu1 %v3053_v40  ;;  %v3106_v40 = vld [vmem:[%s3967_s1 + $0x268] sm:$0xff]  }
  0x22   :  { %2714 = vmatprep.subr.bf16.mxu1 %v3056_v45  ;;  %1855 = vmatmul.mubr.bf16.vlgmr.msra.gmra.mrb[0].mxu0 %v459_v43  ;;  %v3107_v43 = vld [vmem:[%s3967_s1 + $0x228] sm:$0xff]  }
  0x23   :  { %2693 = vmatpush3.bf16.msra.mxu0 %v3055_v47  ;;  %1934 = vmatprep.mubr.bf16.mxu0 %v480_v53  ;;  %v3109_v45 = vld [vmem:[%s3967_s1 + $0x2a8] sm:$0xff]   ;;  %v3111_v47 = vld [vmem:[%s3967_s1 + $0x230] sm:$0xff]   ;;  %v492_v53 = vrot.slane %v22_v51, %v3349_v34 }
  0x24   :  { %1895 = vmatmul.mubr.bf16.vlgmr.msra.gmra.mrb[0].mxu1 %v481_v49  ;;  %2694 = vmatprep.subr.bf16.mxu0 %v3058_v50  ;;  %v3113_v49 = vld [vmem:[%s3967_s1 + $0x2b0] sm:$0xff]   ;;  %v3116_v50 = vld [vmem:[%s3967_s1 + $0x2f8] sm:$0xff]  }
  0x25   :  { %2715 = vmatpush3.bf16.msra.mxu1 %v3057_v52  ;;  %1974 = vmatprep.mubr.bf16.mxu1 %v484_v56  ;;  %v3115_v52 = vld [vmem:[%s3967_s1 + $0x238] sm:$0xff]   ;;  %v500_v56 = vcombine.high %v492_v53, %v492_v53 }
  0x26   :  { %2716 = vmatprep.subr.bf16.mxu1 %v3060_v54  ;;  %v485_v54 = vcombine.high %v22_v51, %v22_v51  ;;  %v3167_v51 = vld [vmem:[%s3967_s1 + $0x460] sm:$0xff]  }
  0x27   :  { %2695 = vmatpush3.bf16.msra.mxu0 %v3059_v55  ;;  %v3118_v55 = vld [vmem:[%s3967_s1 + $0x340] sm:$0xff]  }
  0x28   :  { %2696 = vmatprep.subr.bf16.mxu0 %v3062_v57  ;;  %v3117_v57 = vld [vmem:[%s3967_s1 + $0x2b8] sm:$0xff]  }
  0x29   :  { %2717 = vmatpush3.bf16.msra.mxu1 %v3061_v58  ;;  %v508_v58 = vrot.slane %v492_v53, %v3349_v34  ;;  %v3169_v53 = vld [vmem:[%s3967_s1 + $0x4e0] sm:$0xff]  }
  0x2a   :  { %2718 = vmatprep.subr.bf16.mxu1 %v3064_v59  ;;  %v3575_v59 = vrot.slane %v485_v54, %v3349_v34  ;;  %v3168_v54 = vld [vmem:[%s3967_s1 + $0x420] sm:$0xff]  }
  0x2b   :  { %2697 = vmatpush3.bf16.msra.mxu0 %v3063_v60  ;;  %v3120_v60 = vld [vmem:[%s3967_s1 + $0x3c0] sm:$0xff]  }
  0x2c   :  { %2698 = vmatprep.subr.bf16.mxu0 %v3066_v61  ;;  %v522_v61 = vrot.slane %v500_v56, %v3349_v34  ;;  %v3170_v56 = vld [vmem:[%s3967_s1 + $0x4a0] sm:$0xff]  }
  0x2d   :  { %2719 = vmatpush3.bf16.msra.mxu1 %v3065_v62  ;;  %v3119_v62 = vld [vmem:[%s3967_s1 + $0x300] sm:$0xff]  }
  0x2e   :  { %2720 = vmatprep.subr.bf16.mxu1 %v3068_v63  ;;  %v501_v63 = vcombine.high %v3575_v59, %v3575_v59 }
  0x2f   :  { %2699 = vmatpush3.bf16.msra.mxu0 %v3067_v0  ;;  %v530_v0 = vcombine.high %v508_v58, %v508_v58 }
  0x30   :  { %2700 = vmatprep.subr.bf16.mxu0 %v3070_v1  ;;  %v3122_v1 = vld [vmem:[%s3967_s1 + $0x348] sm:$0xff]  }
  0x31   :  { %2721 = vmatpush3.bf16.msra.mxu1 %v3069_v2  ;;  %v532_v2 = vcombine.high %v522_v61, %v522_v61 }
  0x32   :  { %2722 = vmatprep.subr.bf16.mxu1 %v3072_v3  ;;  %v3121_v3 = vld [vmem:[%s3967_s1 + $0x380] sm:$0xff]  }
  0x33   :  { %2701 = vmatpush3.bf16.msra.mxu0 %v3071_v4  ;;  %v529_v4 = vrot.slane %v501_v63, %v3349_v34  ;;  %v3179_v63 = vld [vmem:[%s3967_s1 + $0x478] sm:$0xff]  }
  0x34   :  { %2702 = vmatprep.subr.bf16.mxu0 %v3074_v5  ;;  %v3124_v5 = vld [vmem:[%s3967_s1 + $0x3c8] sm:$0xff]  }
  0x35   :  { %2723 = vmatpush3.bf16.msra.mxu1 %v3073_v6  ;;  %v3123_v6 = vld [vmem:[%s3967_s1 + $0x308] sm:$0xff]  }
  0x36   :  { %2724 = vmatprep.subr.bf16.mxu1 %v3076_v7  ;;  %v533_v7 = vcombine.high %v529_v4, %v529_v4 }
  0x37   :  { %2703 = vmatpush3.bf16.msra.mxu0 %v3075_v8  ;;  %v3126_v8 = vld [vmem:[%s3967_s1 + $0x350] sm:$0xff]  }
  0x38   :  { %2704 = vmatprep.subr.bf16.mxu0 %v3078_v9  ;;  %v3125_v9 = vld [vmem:[%s3967_s1 + $0x388] sm:$0xff]  }
  0x39   :  { %2725 = vmatpush3.bf16.msra.mxu1 %v3077_v10  ;;  %v3128_v10 = vld [vmem:[%s3967_s1 + $0x3d0] sm:$0xff]  }
  0x3a   :  { %2726 = vmatprep.subr.bf16.mxu1 %v3080_v11  ;;  %v3127_v11 = vld [vmem:[%s3967_s1 + $0x310] sm:$0xff]  }
  0x3b   :  { %2705 = vmatpush3.bf16.msra.mxu0 %v3079_v12  ;;  %v3130_v12 = vld [vmem:[%s3967_s1 + $0x358] sm:$0xff]  }
  0x3c   :  { %2706 = vmatprep.subr.bf16.mxu0 %v3082_v13  ;;  %v3129_v13 = vld [vmem:[%s3967_s1 + $0x390] sm:$0xff]  }
  0x3d   :  { %2727 = vmatpush3.bf16.msra.mxu1 %v3081_v14  ;;  %v3132_v14 = vld [vmem:[%s3967_s1 + $0x3d8] sm:$0xff]  }
  0x3e   :  { %2728 = vmatprep.subr.bf16.mxu1 %v3084_v15  ;;  %v3131_v15 = vld [vmem:[%s3967_s1 + $0x318] sm:$0xff]  }
  0x3f   :  { %2707 = vmatpush3.bf16.msra.mxu0 %v3083_v16  ;;  %v3134_v16 = vld [vmem:[%s3967_s1 + $0x360] sm:$0xff]  }
  0x40   :  { %2736 = vmatprep.subr.bf16.mxu0 %v3086_v18  ;;  %v3136_v18 = vld [vmem:[%s3967_s1 + $0x3e0] sm:$0xff]  }
  0x41   :  { %2729 = vmatpush3.bf16.msra.mxu1 %v3085_v19  ;;  %v3135_v19 = vld [vmem:[%s3967_s1 + $0x320] sm:$0xff]  }
  0x42   :  { %1935 = vmatmul.mubr.bf16.vlgmr.msra.gmra.mrb[4].mxu0 %v466_v17  ;;  %2758 = vmatprep.subr.bf16.mxu1 %v3088_v20  ;;  %v3133_v17 = vld [vmem:[%s3967_s1 + $0x398] sm:$0xff]   ;;  %v3138_v20 = vld [vmem:[%s3967_s1 + $0x368] sm:$0xff]  }
  0x43   :  { %2737 = vmatpush3.bf16.msra.mxu0 %v3087_v21  ;;  %2014 = vmatprep.mubr.bf16.mxu0 %v522_v61  ;;  %v3137_v21 = vld [vmem:[%s3967_s1 + $0x3a0] sm:$0xff]   ;;  %v3177_v61 = vld [vmem:[%s3967_s1 + $0x4f0] sm:$0xff]  }
  0x44   :  { %1975 = vmatmul.mubr.bf16.vlgmr.msra.gmra.mrb[4].mxu1 %v482_v22  ;;  %2738 = vmatprep.subr.bf16.mxu0 %v3090_v23  ;;  %v3140_v22 = vld [vmem:[%s3967_s1 + $0x3e8] sm:$0xff]  }
  0x45   :  { %2759 = vmatpush3.bf16.msra.mxu1 %v3089_v24  ;;  %2054 = vmatprep.mubr.bf16.mxu1 %v532_v2  ;;  %v3139_v23 = vld [vmem:[%s3967_s1 + $0x328] sm:$0xff]   ;;  %v3142_v24 = vld [vmem:[%s3967_s1 + $0x370] sm:$0xff]  }
  0x46   :  { %2760 = vmatprep.subr.bf16.mxu1 %v3092_v25  ;;  %v3141_v25 = vld [vmem:[%s3967_s1 + $0x3a8] sm:$0xff]   ;;  %v23_v2 = vld [vmem:[%s3968_s0 + $0x10] sm:$0xff] }
  0x47   :  { %2739 = vmatpush3.bf16.msra.mxu0 %v3091_v26  ;;  %v3144_v26 = vld [vmem:[%s3967_s1 + $0x3f0] sm:$0xff]  }
  0x48   :  { %2740 = vmatprep.subr.bf16.mxu0 %v3094_v27  ;;  %v3143_v27 = vld [vmem:[%s3967_s1 + $0x330] sm:$0xff]  }
  0x49   :  { %2761 = vmatpush3.bf16.msra.mxu1 %v3093_v28  ;;  %v3146_v28 = vld [vmem:[%s3967_s1 + $0x378] sm:$0xff]  }
  0x4a   :  { %2762 = vmatprep.subr.bf16.mxu1 %v3096_v29  ;;  %v3145_v29 = vld [vmem:[%s3967_s1 + $0x3b0] sm:$0xff]  }
  0x4b   :  { %2741 = vmatpush3.bf16.msra.mxu0 %v3095_v30  ;;  %v3148_v30 = vld [vmem:[%s3967_s1 + $0x3f8] sm:$0xff]  }
  0x4c   :  { %2742 = vmatprep.subr.bf16.mxu0 %v3098_v31  ;;  %v3147_v31 = vld [vmem:[%s3967_s1 + $0x338] sm:$0xff]  }
  0x4d   :  { %2763 = vmatpush3.bf16.msra.mxu1 %v3097_v32  ;;  %v515_v32 = vrot.slane %v3575_v59, %v3349_v34  ;;  %v3175_v59 = vld [vmem:[%s3967_s1 + $0x470] sm:$0xff]  }
  0x4e   :  { %2764 = vmatprep.subr.bf16.mxu1 %v3100_v33  ;;  %v3151_v33 = vld [vmem:[%s3967_s1 + $0x440] sm:$0xff]  }
  0x4f   :  { %2743 = vmatpush3.bf16.msra.mxu0 %v3099_v35  ;;  %v3150_v35 = vld [vmem:[%s3967_s1 + $0x3b8] sm:$0xff]  }
  0x50   :  { %2744 = vmatprep.subr.bf16.mxu0 %v3102_v36  ;;  %v3153_v36 = vld [vmem:[%s3967_s1 + $0x4c0] sm:$0xff]  }
  0x51   :  { %2765 = vmatpush3.bf16.msra.mxu1 %v3101_v37  ;;  %v3152_v37 = vld [vmem:[%s3967_s1 + $0x400] sm:$0xff]  }
  0x52   :  { %2766 = vmatprep.subr.bf16.mxu1 %v3104_v38  ;;  %v531_v38 = vcombine.high %v515_v32, %v515_v32 }
  0x53   :  { %2745 = vmatpush3.bf16.msra.mxu0 %v3103_v39  ;;  %v3155_v39 = vld [vmem:[%s3967_s1 + $0x448] sm:$0xff]  }
  0x54   :  { %2746 = vmatprep.subr.bf16.mxu0 %v3106_v40  ;;  %v3154_v40 = vld [vmem:[%s3967_s1 + $0x480] sm:$0xff]  }
  0x55   :  { %2767 = vmatpush3.bf16.msra.mxu1 %v3105_v41  ;;  %v3157_v41 = vld [vmem:[%s3967_s1 + $0x4c8] sm:$0xff]  }
  0x56   :  { %2768 = vmatprep.subr.bf16.mxu1 %v3108_v42  ;;  %v3156_v42 = vld [vmem:[%s3967_s1 + $0x408] sm:$0xff]  }
  0x57   :  { %2747 = vmatpush3.bf16.msra.mxu0 %v3107_v43  ;;  %v3159_v43 = vld [vmem:[%s3967_s1 + $0x450] sm:$0xff]  }
  0x58   :  { %2748 = vmatprep.subr.bf16.mxu0 %v3110_v44  ;;  %v3158_v44 = vld [vmem:[%s3967_s1 + $0x488] sm:$0xff]  }
  0x59   :  { %2769 = vmatpush3.bf16.msra.mxu1 %v3109_v45  ;;  %v3161_v45 = vld [vmem:[%s3967_s1 + $0x4d0] sm:$0xff]  }
  0x5a   :  { %2770 = vmatprep.subr.bf16.mxu1 %v3112_v46  ;;  %v3160_v46 = vld [vmem:[%s3967_s1 + $0x410] sm:$0xff]  }
  0x5b   :  { %2749 = vmatpush3.bf16.msra.mxu0 %v3111_v47  ;;  %v3163_v47 = vld [vmem:[%s3967_s1 + $0x458] sm:$0xff]  }
  0x5c   :  { %2750 = vmatprep.subr.bf16.mxu0 %v3114_v48  ;;  %v3162_v48 = vld [vmem:[%s3967_s1 + $0x490] sm:$0xff]  }
  0x5d   :  { %2771 = vmatpush3.bf16.msra.mxu1 %v3113_v49  ;;  %v3165_v49 = vld [vmem:[%s3967_s1 + $0x4d8] sm:$0xff]  }
  0x5e   :  { %2772 = vmatprep.subr.bf16.mxu1 %v3116_v50  ;;  %v3164_v50 = vld [vmem:[%s3967_s1 + $0x418] sm:$0xff]  }
  0x5f   :  { %2751 = vmatpush3.bf16.msra.mxu0 %v3115_v52  ;;  %v3166_v52 = vld [vmem:[%s3967_s1 + $0x498] sm:$0xff]  }
  0x60   :  { %2780 = vmatprep.subr.bf16.mxu0 %v3118_v55  ;;  %v3171_v55 = vld [vmem:[%s3967_s1 + $0x468] sm:$0xff]  }
  0x61   :  { %2773 = vmatpush3.bf16.msra.mxu1 %v3117_v57  ;;  %v3173_v57 = vld [vmem:[%s3967_s1 + $0x4e8] sm:$0xff]  }
  0x62   :  { %2015 = vmatmul.mubr.bf16.vlgmr.msra.gmra.mrb[8].mxu0 %v508_v58  ;;  %2802 = vmatprep.subr.bf16.mxu1 %v3120_v60  ;;  %v3172_v58 = vld [vmem:[%s3967_s1 + $0x428] sm:$0xff]  }
  0x63   :  { %2781 = vmatpush3.bf16.msra.mxu0 %v3119_v62  ;;  %2094 = vmatprep.mubr.bf16.mxu0 %v529_v4  ;;  %v3174_v60 = vld [vmem:[%s3967_s1 + $0x4a8] sm:$0xff]   ;;  %v3176_v62 = vld [vmem:[%s3967_s1 + $0x430] sm:$0xff]   ;;  %v541_v4 = vrot.slane %v23_v2, %v3349_v34 }
  0x64   :  { %2055 = vmatmul.mubr.bf16.vlgmr.msra.gmra.mrb[8].mxu1 %v530_v0  ;;  %2782 = vmatprep.subr.bf16.mxu0 %v3122_v1  ;;  %v3178_v0 = vld [vmem:[%s3967_s1 + $0x4b0] sm:$0xff]   ;;  %v3181_v1 = vld [vmem:[%s3967_s1 + $0x4f8] sm:$0xff]  }
  0x65   :  { %2803 = vmatpush3.bf16.msra.mxu1 %v3121_v3  ;;  %2134 = vmatprep.mubr.bf16.mxu1 %v533_v7  ;;  %v3180_v3 = vld [vmem:[%s3967_s1 + $0x438] sm:$0xff]   ;;  %v549_v7 = vcombine.high %v541_v4, %v541_v4 }
  0x66   :  { %2804 = vmatprep.subr.bf16.mxu1 %v3124_v5  ;;  %v534_v5 = vcombine.high %v23_v2, %v23_v2 }
  0x67   :  { %2783 = vmatpush3.bf16.msra.mxu0 %v3123_v6  ;;  %v3183_v6 = vld [vmem:[%s3967_s1 + $0x540] sm:$0xff]  }
  0x68   :  { %2784 = vmatprep.subr.bf16.mxu0 %v3126_v8  ;;  %v3182_v8 = vld [vmem:[%s3967_s1 + $0x4b8] sm:$0xff]  }
  0x69   :  { %2805 = vmatpush3.bf16.msra.mxu1 %v3125_v9  ;;  %v557_v9 = vrot.slane %v541_v4, %v3349_v34 }
  0x6a   :  { %2806 = vmatprep.subr.bf16.mxu1 %v3128_v10  ;;  %v3781_v10 = vrot.slane %v534_v5, %v3349_v34 }
  0x6b   :  { %2785 = vmatpush3.bf16.msra.mxu0 %v3127_v11  ;;  %v3185_v11 = vld [vmem:[%s3967_s1 + $0x5c0] sm:$0xff]  }
  0x6c   :  { %2786 = vmatprep.subr.bf16.mxu0 %v3130_v12  ;;  %v571_v12 = vrot.slane %v549_v7, %v3349_v34 }
  0x6d   :  { %2807 = vmatpush3.bf16.msra.mxu1 %v3129_v13  ;;  %v3184_v13 = vld [vmem:[%s3967_s1 + $0x500] sm:$0xff]  }
  0x6e   :  { %2808 = vmatprep.subr.bf16.mxu1 %v3132_v14  ;;  %v550_v14 = vcombine.high %v3781_v10, %v3781_v10 }
  0x6f   :  { %2787 = vmatpush3.bf16.msra.mxu0 %v3131_v15  ;;  %v579_v15 = vcombine.high %v557_v9, %v557_v9 }
  0x70   :  { %2788 = vmatprep.subr.bf16.mxu0 %v3134_v16  ;;  %v3187_v16 = vld [vmem:[%s3967_s1 + $0x548] sm:$0xff]  }
  0x71   :  { %2809 = vmatpush3.bf16.msra.mxu1 %v3133_v17  ;;  %v581_v17 = vcombine.high %v571_v12, %v571_v12 }
  0x72   :  { %2810 = vmatprep.subr.bf16.mxu1 %v3136_v18  ;;  %v3186_v18 = vld [vmem:[%s3967_s1 + $0x580] sm:$0xff]  }
  0x73   :  { %2789 = vmatpush3.bf16.msra.mxu0 %v3135_v19  ;;  %v578_v19 = vrot.slane %v550_v14, %v3349_v34 }
  0x74   :  { %2790 = vmatprep.subr.bf16.mxu0 %v3138_v20  ;;  %v3189_v20 = vld [vmem:[%s3967_s1 + $0x5c8] sm:$0xff]  }
  0x75   :  { %2811 = vmatpush3.bf16.msra.mxu1 %v3137_v21  ;;  %v3188_v21 = vld [vmem:[%s3967_s1 + $0x508] sm:$0xff]  }
  0x76   :  { %2812 = vmatprep.subr.bf16.mxu1 %v3140_v22  ;;  %v582_v22 = vcombine.high %v578_v19, %v578_v19 }
  0x77   :  { %2791 = vmatpush3.bf16.msra.mxu0 %v3139_v23  ;;  %v3191_v23 = vld [vmem:[%s3967_s1 + $0x550] sm:$0xff]  }
  0x78   :  { %2792 = vmatprep.subr.bf16.mxu0 %v3142_v24  ;;  %v3190_v24 = vld [vmem:[%s3967_s1 + $0x588] sm:$0xff]  }
  0x79   :  { %2813 = vmatpush3.bf16.msra.mxu1 %v3141_v25  ;;  %v3193_v25 = vld [vmem:[%s3967_s1 + $0x5d0] sm:$0xff]  }
  0x7a   :  { %2814 = vmatprep.subr.bf16.mxu1 %v3144_v26  ;;  %v3192_v26 = vld [vmem:[%s3967_s1 + $0x510] sm:$0xff]  }
  0x7b   :  { %2793 = vmatpush3.bf16.msra.mxu0 %v3143_v27  ;;  %v3195_v27 = vld [vmem:[%s3967_s1 + $0x558] sm:$0xff]  }
  0x7c   :  { %2794 = vmatprep.subr.bf16.mxu0 %v3146_v28  ;;  %v3194_v28 = vld [vmem:[%s3967_s1 + $0x590] sm:$0xff]  }
  0x7d   :  { %2815 = vmatpush3.bf16.msra.mxu1 %v3145_v29  ;;  %v3197_v29 = vld [vmem:[%s3967_s1 + $0x5d8] sm:$0xff]  }
  0x7e   :  { %2816 = vmatprep.subr.bf16.mxu1 %v3148_v30  ;;  %v3196_v30 = vld [vmem:[%s3967_s1 + $0x518] sm:$0xff]  }
  0x7f   :  { %2795 = vmatpush3.bf16.msra.mxu0 %v3147_v31  ;;  %v3199_v31 = vld [vmem:[%s3967_s1 + $0x560] sm:$0xff]  }
  0x80   :  { %2824 = vmatprep.subr.bf16.mxu0 %v3151_v33  ;;  %v3201_v33 = vld [vmem:[%s3967_s1 + $0x5e0] sm:$0xff]  }
  0x81   :  { %2817 = vmatpush3.bf16.msra.mxu1 %v3150_v35  ;;  %v3200_v35 = vld [vmem:[%s3967_s1 + $0x520] sm:$0xff]  }
  0x82   :  { %2095 = vmatmul.mubr.bf16.vlgmr.msra.gmra.mrb[12].mxu0 %v515_v32  ;;  %2846 = vmatprep.subr.bf16.mxu1 %v3153_v36  ;;  %v3198_v32 = vld [vmem:[%s3967_s1 + $0x598] sm:$0xff]   ;;  %v3203_v36 = vld [vmem:[%s3967_s1 + $0x568] sm:$0xff]  }
  0x83   :  { %2825 = vmatpush3.bf16.msra.mxu0 %v3152_v37  ;;  %2174 = vmatprep.mubr.bf16.mxu0 %v571_v12  ;;  %v3202_v37 = vld [vmem:[%s3967_s1 + $0x5a0] sm:$0xff]  }
  0x84   :  { %2135 = vmatmul.mubr.bf16.vlgmr.msra.gmra.mrb[12].mxu1 %v531_v38  ;;  %2826 = vmatprep.subr.bf16.mxu0 %v3155_v39  ;;  %v3205_v38 = vld [vmem:[%s3967_s1 + $0x5e8] sm:$0xff]  }
  0x85   :  { %2847 = vmatpush3.bf16.msra.mxu1 %v3154_v40  ;;  %2214 = vmatprep.mubr.bf16.mxu1 %v581_v17  ;;  %v3204_v39 = vld [vmem:[%s3967_s1 + $0x528] sm:$0xff]   ;;  %v3207_v40 = vld [vmem:[%s3967_s1 + $0x570] sm:$0xff]  }
  0x86   :  { %2848 = vmatprep.subr.bf16.mxu1 %v3157_v41  ;;  %v3206_v41 = vld [vmem:[%s3967_s1 + $0x5a8] sm:$0xff]  }
  0x87   :  { %2827 = vmatpush3.bf16.msra.mxu0 %v3156_v42  ;;  %v3209_v42 = vld [vmem:[%s3967_s1 + $0x5f0] sm:$0xff]  }
  0x88   :  { %2828 = vmatprep.subr.bf16.mxu0 %v3159_v43  ;;  %v3208_v43 = vld [vmem:[%s3967_s1 + $0x530] sm:$0xff]  }
  0x89   :  { %2849 = vmatpush3.bf16.msra.mxu1 %v3158_v44  ;;  %v3211_v44 = vld [vmem:[%s3967_s1 + $0x578] sm:$0xff]  }
  0x8a   :  { %2850 = vmatprep.subr.bf16.mxu1 %v3161_v45  ;;  %v3210_v45 = vld [vmem:[%s3967_s1 + $0x5b0] sm:$0xff]  }
  0x8b   :  { %2829 = vmatpush3.bf16.msra.mxu0 %v3160_v46  ;;  %v3213_v46 = vld [vmem:[%s3967_s1 + $0x5f8] sm:$0xff]  }
  0x8c   :  { %2830 = vmatprep.subr.bf16.mxu0 %v3163_v47  ;;  %v3212_v47 = vld [vmem:[%s3967_s1 + $0x538] sm:$0xff]  }
  0x8d   :  { %2851 = vmatpush3.bf16.msra.mxu1 %v3162_v48  ;;  %v564_v48 = vrot.slane %v3781_v10, %v3349_v34 }
  0x8e   :  { %2852 = vmatprep.subr.bf16.mxu1 %v3165_v49  ;;  %v3215_v49 = vld [vmem:[%s3967_s1 + $0x5b8] sm:$0xff]  }
  0x8f   :  { %2831 = vmatpush3.bf16.msra.mxu0 %v3164_v50  ;;  %v3216_v50 = vld [vmem:[%s3967_s1 + $0x600] sm:$0xff]  }
  0x90   :  { %2832 = vmatprep.subr.bf16.mxu0 %v3167_v51  ;;  %v3229_v51 = vmov 0.0  }
  0x91   :  { %2853 = vmatpush3.bf16.msra.mxu1 %v3166_v52  ;;  %v580_v52 = vcombine.high %v564_v48, %v564_v48 }
  0x92   :  { %2854 = vmatprep.subr.bf16.mxu1 %v3169_v53  ;;  %v3217_v53 = vld [vmem:[%s3967_s1 + $0x608] sm:$0xff]  }
  0x93   :  { %2833 = vmatpush3.bf16.msra.mxu0 %v3168_v54  ;;  %v3218_v54 = vld [vmem:[%s3967_s1 + $0x610] sm:$0xff]  }
  0x94   :  { %2834 = vmatprep.subr.bf16.mxu0 %v3171_v55  ;;  %v3219_v55 = vld [vmem:[%s3967_s1 + $0x618] sm:$0xff]  }
  0x95   :  { %2855 = vmatpush3.bf16.msra.mxu1 %v3170_v56  ;;  %v3220_v56 = vld [vmem:[%s3967_s1 + $0x620] sm:$0xff]  }
  0x96   :  { %2856 = vmatprep.subr.bf16.mxu1 %v3173_v57  ;;  %v3221_v57 = vld [vmem:[%s3967_s1 + $0x628] sm:$0xff]  }
  0x97   :  { %2835 = vmatpush3.bf16.msra.mxu0 %v3172_v58  ;;  %v3222_v58 = vld [vmem:[%s3967_s1 + $0x630] sm:$0xff]  }
  0x98   :  { %2836 = vmatprep.subr.bf16.mxu0 %v3175_v59  ;;  %v3223_v59 = vld [vmem:[%s3967_s1 + $0x638] sm:$0xff]  }
  0x99   :  { %2857 = vmatpush3.bf16.msra.mxu1 %v3174_v60  ;;  %v2446_v60 = vld.sshfl [vmem:[%s3968_s0 + $0x18] sm:$0x1 pattern:$0x75316420] }
  0x9a   :  { %2858 = vmatprep.subr.bf16.mxu1 %v3177_v61  ;;  %v596_v61 = vrot.slane %v2446_v60, %v3349_v34 }
  0x9b   :  { %2837 = vmatpush3.bf16.msra.mxu0 %v3176_v62 }
  0x9c   :  { %2838 = vmatprep.subr.bf16.mxu0 %v3179_v63  ;;  %v2445_v63 = vld [vmem:[%s3969_s2] ss:$0 sm:$0xff] }
  0x9d   :  { %2859 = vmatpush3.bf16.msra.mxu1 %v3178_v0 }
  0x9e   :  { %2860 = vmatprep.subr.bf16.mxu1 %v3181_v1 }
  0x9f   :  { %2839 = vmatpush3.bf16.msra.mxu0 %v3180_v3 }
  0xa0   :  { %2868 = vmatprep.subr.bf16.mxu0 %v3183_v6 }
  0xa1   :  { %2861 = vmatpush3.bf16.msra.mxu1 %v3182_v8 }
  0xa2   :  { %2175 = vmatmul.mubr.bf16.vlgmr.msra.gmra.mrb[16].mxu0 %v557_v9  ;;  %2890 = vmatprep.subr.bf16.mxu1 %v3185_v11 }
  0xa3   :  { %2869 = vmatpush3.bf16.msra.mxu0 %v3184_v13  ;;  %2254 = vmatprep.mubr.bf16.mxu0 %v578_v19 }
  0xa4   :  { %2215 = vmatmul.mubr.bf16.vlgmr.msra.gmra.mrb[16].mxu1 %v579_v15  ;;  %2870 = vmatprep.subr.bf16.mxu0 %v3187_v16 }
  0xa5   :  { %2891 = vmatpush3.bf16.msra.mxu1 %v3186_v18  ;;  %2294 = vmatprep.mubr.bf16.mxu1 %v582_v22  ;;  %v2343_v22 = vld [vmem:[%s3970_s3] sm:$0xff] }
  0xa6   :  { %2892 = vmatprep.subr.bf16.mxu1 %v3189_v20 }
  0xa7   :  { %2871 = vmatpush3.bf16.msra.mxu0 %v3188_v21  ;;  %v3231_v21 = vmov 0.0|0.0  }
  0xa8   :  { %2872 = vmatprep.subr.bf16.mxu0 %v3191_v23  ;;  %v2344_v23 = vld [vmem:[%s3970_s3 + $0x8] sm:$0xff] }
  0xa9   :  { %2893 = vmatpush3.bf16.msra.mxu1 %v3190_v24  ;;  %v2345_v24 = vld [vmem:[%s3970_s3 + $0x10] sm:$0xff] }
  0xaa   :  { %2894 = vmatprep.subr.bf16.mxu1 %v3193_v25 }
  0xab   :  { %2873 = vmatpush3.bf16.msra.mxu0 %v3192_v26  ;;  %v2994_v26 = vpack.c.bf16 %v2344_v23, %v2343_v22 }
  0xac   :  { %2874 = vmatprep.subr.bf16.mxu0 %v3195_v27  ;;  %v2346_v27 = vld [vmem:[%s3970_s3 + $0x18] sm:$0xff] }
  0xad   :  { %2895 = vmatpush3.bf16.msra.mxu1 %v3194_v28  ;;  %v2997_v28 = vpack.c.bf16 %v2346_v27, %v2345_v24 }
  0xae   :  { %2896 = vmatprep.subr.bf16.mxu1 %v3197_v29  ;;  %v2347_v29 = vld [vmem:[%s3970_s3 + $0x20] sm:$0xff] }
  0xaf   :  { %2875 = vmatpush3.bf16.msra.mxu0 %v3196_v30  ;;  %v2348_v30 = vld [vmem:[%s3970_s3 + $0x28] sm:$0xff] }
  0xb0   :  { %2876 = vmatprep.subr.bf16.mxu0 %v3199_v31  ;;  %v3000_v31 = vpack.c.bf16 %v2348_v30, %v2347_v29 }
  0xb1   :  { %2897 = vmatpush3.bf16.msra.mxu1 %v3198_v32  ;;  %v2349_v32 = vld [vmem:[%s3970_s3 + $0x30] sm:$0xff] }
  0xb2   :  { %2898 = vmatprep.subr.bf16.mxu1 %v3201_v33  ;;  %v2350_v33 = vld [vmem:[%s3970_s3 + $0x38] sm:$0xff] }
  0xb3   :  { %2877 = vmatpush3.bf16.msra.mxu0 %v3200_v35  ;;  %v3003_v35 = vpack.c.bf16 %v2350_v33, %v2349_v32 }
  0xb4   :  { %2878 = vmatprep.subr.bf16.mxu0 %v3203_v36  ;;  %v2351_v36 = vld [vmem:[%s3970_s3 + $0x40] sm:$0xff] }
  0xb5   :  { %2899 = vmatpush3.bf16.msra.mxu1 %v3202_v37  ;;  %v2352_v37 = vld [vmem:[%s3970_s3 + $0x48] sm:$0xff] }
  0xb6   :  { %2900 = vmatprep.subr.bf16.mxu1 %v3205_v38  ;;  %v3006_v38 = vpack.c.bf16 %v2352_v37, %v2351_v36 }
  0xb7   :  { %2879 = vmatpush3.bf16.msra.mxu0 %v3204_v39 }
  0xb8   :  { %2880 = vmatprep.subr.bf16.mxu0 %v3207_v40  ;;  %v2353_v40 = vld [vmem:[%s3970_s3 + $0x50] sm:$0xff] }
  0xb9   :  { %2901 = vmatpush3.bf16.msra.mxu1 %v3206_v41  ;;  %v2354_v41 = vld [vmem:[%s3970_s3 + $0x58] sm:$0xff] }
  0xba   :  { %2902 = vmatprep.subr.bf16.mxu1 %v3209_v42 }
  0xbb   :  { %2881 = vmatpush3.bf16.msra.mxu0 %v3208_v43  ;;  %v3009_v43 = vpack.c.bf16 %v2354_v41, %v2353_v40 }
  0xbc   :  { %2882 = vmatprep.subr.bf16.mxu0 %v3211_v44 }
  0xbd   :  { %2903 = vmatpush3.bf16.msra.mxu1 %v3210_v45 }
  0xbe   :  { %2904 = vmatprep.subr.bf16.mxu1 %v3213_v46 }
  0xbf   :  { %2883 = vmatpush3.bf16.msra.mxu0 %v3212_v47 }
  0xc0   :  { %2938 = vmatprep.subr.bf16.mxu0 %v3229_v51 }
  0xc1   :  { %2905 = vmatpush3.bf16.msra.mxu1 %v3215_v49  ;;  %v2355_v49 = vld [vmem:[%s3970_s3 + $0x60] sm:$0xff] }
  0xc2   :  { %2255 = vmatmul.mubr.bf16.vlgmr.msra.gmra.mrb[20].mxu0 %v564_v48  ;;  %2993 = vmatprep.subr.bf16.mxu1 %v3231_v21 }
  0xc3   :  { %2939 = vmatpush3.bf16.msra.mxu0 %v3216_v50  ;;  %2954 = vmatprep.mubr.msk.bf16.mxu0 %vm3230_vm0, %v3229_v51  ;;  %v2356_v50 = vld [vmem:[%s3970_s3 + $0x68] sm:$0xff] }
  0xc4   :  { %2295 = vmatmul.mubr.bf16.vlgmr.msra.gmra.mrb[20].mxu1 %v580_v52  ;;  %2940 = vmatprep.subr.bf16.mxu0 %v3229_v51 }
  0xc5   :  { %2990 = vmatprep.mubr.msk.f32.mxu1 %vm3230_vm0, %v3229_v51  ;;  %2995 = vmatpush3.bf16.msra.mxu1 %v2994_v26 }
  0xc6   :  { %2996 = vmatprep.subr.bf16.mxu1 %v3231_v21 }
  0xc7   :  { %2941 = vmatpush3.bf16.msra.mxu0 %v3217_v53 }
  0xc8   :  { %2942 = vmatprep.subr.bf16.mxu0 %v3229_v51 }
  0xc9   :  { %2998 = vmatpush3.bf16.msra.mxu1 %v2997_v28 }
  0xca   :  { %2999 = vmatprep.subr.bf16.mxu1 %v3231_v21 }
  0xcb   :  { %2943 = vmatpush3.bf16.msra.mxu0 %v3218_v54  ;;  %v3012_v54 = vpack.c.bf16 %v2356_v50, %v2355_v49 }
  0xcc   :  { %2944 = vmatprep.subr.bf16.mxu0 %v3229_v51 }
  0xcd   :  { %3001 = vmatpush3.bf16.msra.mxu1 %v3000_v31 }
  0xce   :  { %3002 = vmatprep.subr.bf16.mxu1 %v3231_v21 }
  0xcf   :  { %2945 = vmatpush3.bf16.msra.mxu0 %v3219_v55  ;;  %v2357_v55 = vld [vmem:[%s3970_s3 + $0x70] sm:$0xff] }
  0xd0   :  { %2946 = vmatprep.subr.bf16.mxu0 %v3229_v51 }
  0xd1   :  { %3004 = vmatpush3.bf16.msra.mxu1 %v3003_v35 }
  0xd2   :  { %3005 = vmatprep.subr.bf16.mxu1 %v3231_v21 }
  0xd3   :  { %2947 = vmatpush3.bf16.msra.mxu0 %v3220_v56  ;;  %v2358_v56 = vld [vmem:[%s3970_s3 + $0x78] sm:$0xff] }
  0xd4   :  { %2948 = vmatprep.subr.bf16.mxu0 %v3229_v51 }
  0xd5   :  { %3007 = vmatpush3.bf16.msra.mxu1 %v3006_v38  ;;  %v2647_v38 = vld [vmem:[%s3971_s4] ss:$0 sm:$0xff] }
  0xd6   :  { %3008 = vmatprep.subr.bf16.mxu1 %v3231_v21 }
  0xd7   :  { %2949 = vmatpush3.bf16.msra.mxu0 %v3221_v57 }
  0xd8   :  { %2950 = vmatprep.subr.bf16.mxu0 %v3229_v51 }
  0xd9   :  { %3010 = vmatpush3.bf16.msra.mxu1 %v3009_v43 }
  0xda   :  { %3011 = vmatprep.subr.bf16.mxu1 %v3231_v21 }
  0xdb   :  { %2951 = vmatpush3.bf16.msra.mxu0 %v3222_v58 }
  0xdc   :  { %2952 = vmatprep.subr.bf16.mxu0 %v3229_v51 }
  0xdd   :  { %3013 = vmatpush3.bf16.msra.mxu1 %v3012_v54 }
  0xde   :  { %3014 = vmatprep.subr.bf16.mxu1 %v3231_v21 }
  0xdf   :  { %2953 = vmatpush3.bf16.msra.mxu0 %v3223_v59  ;;  %v3015_v59 = vpack.c.bf16 %v2358_v56, %v2357_v55 }
  0xe1   :  { %3016 = vmatpush3.bf16.msra.mxu1 %v3015_v59 }
  0xe2   :  { %2955 = vmatmul.mubr.bf16.vlgmr.msra.gmra.mrb[24].mxu0 %v596_v61 }
  0xf5   :  { %v2664_v62 = vpop.f32.mrb[0].mxu0 }
  0xf6   :  { %v2665_v0 = vpop.f32.mrb[1].mxu0 }
  0xf7   :  { %v2666_v1 = vadd.f32 %v2665_v0, %v2664_v62  ;;  %v2667_v2 = vpop.f32.mrb[2].mxu0  ;;  %v2686_v3 = vpop.f32.mrb[0].mxu1 }
  0xf8   :  { %v2668_v4 = vpop.f32.mrb[3].mxu0  ;;  %v2687_v5 = vpop.f32.mrb[1].mxu1 }
  0xf9   :  { %v1857_v6 = vadd.f32 %v2666_v1, %v2445_v63  ;;  %v2688_v7 = vadd.f32 %v2687_v5, %v2686_v3  ;;  %v2689_v8 = vpop.f32.mrb[2].mxu1 }
  0xfa   :  { %v2690_v9 = vpop.f32.mrb[3].mxu1 }
  0xfb   :  { %v1897_v10 = vadd.f32 %v2688_v7, %v1857_v6 }
 0x115   :  { %v2708_v11 = vpop.f32.mrb[4].mxu0 }
 0x116   :  { %v2709_v34 = vpop.f32.mrb[5].mxu0 }
 0x117   :  { %v2710_v12 = vadd.f32 %v2709_v34, %v2708_v11  ;;  %v2711_v13 = vpop.f32.mrb[6].mxu0  ;;  %v2730_v14 = vpop.f32.mrb[4].mxu1 }
 0x118   :  { %v2712_v15 = vpop.f32.mrb[7].mxu0  ;;  %v2731_v16 = vpop.f32.mrb[5].mxu1 }
 0x119   :  { %v1937_v17 = vadd.f32 %v2710_v12, %v1897_v10  ;;  %v2732_v18 = vadd.f32 %v2731_v16, %v2730_v14  ;;  %v2733_v19 = vpop.f32.mrb[6].mxu1 }
 0x11a   :  { %v2734_v20 = vpop.f32.mrb[7].mxu1 }
 0x11b   :  { %v1977_v25 = vadd.f32 %v2732_v18, %v1937_v17 }
 0x135   :  { %v2752_v39 = vpop.f32.mrb[8].mxu0 }
 0x136   :  { %v2753_v42 = vpop.f32.mrb[9].mxu0 }
 0x137   :  { %v2754_v44 = vadd.f32 %v2753_v42, %v2752_v39  ;;  %v2755_v45 = vpop.f32.mrb[10].mxu0  ;;  %v2774_v46 = vpop.f32.mrb[8].mxu1 }
 0x138   :  { %v2756_v47 = vpop.f32.mrb[11].mxu0  ;;  %v2775_v48 = vpop.f32.mrb[9].mxu1 }
 0x139   :  { %v2017_v51 = vadd.f32 %v2754_v44, %v1977_v25  ;;  %v2776_v52 = vadd.f32 %v2775_v48, %v2774_v46  ;;  %v2777_v53 = vpop.f32.mrb[10].mxu1 }
 0x13a   :  { %v2778_v57 = vpop.f32.mrb[11].mxu1 }
 0x13b   :  { %v2057_v58 = vadd.f32 %v2776_v52, %v2017_v51 }
 0x155   :  { %v2796_v60 = vpop.f32.mrb[12].mxu0 }
 0x156   :  { %v2797_v61 = vpop.f32.mrb[13].mxu0 }
 0x157   :  { %v2798_v62 = vadd.f32 %v2797_v61, %v2796_v60  ;;  %v2799_v63 = vpop.f32.mrb[14].mxu0  ;;  %v2818_v0 = vpop.f32.mrb[12].mxu1 }
 0x158   :  { %v2800_v1 = vpop.f32.mrb[15].mxu0  ;;  %v2819_v2 = vpop.f32.mrb[13].mxu1 }
 0x159   :  { %v2097_v3 = vadd.f32 %v2798_v62, %v2057_v58  ;;  %v2820_v4 = vadd.f32 %v2819_v2, %v2818_v0  ;;  %v2821_v5 = vpop.f32.mrb[14].mxu1 }
 0x15a   :  { %v2822_v6 = vpop.f32.mrb[15].mxu1 }
 0x15b   :  { %v2137_v7 = vadd.f32 %v2820_v4, %v2097_v3 }
 0x175   :  { %v2840_v8 = vpop.f32.mrb[16].mxu0 }
 0x176   :  { %v2841_v9 = vpop.f32.mrb[17].mxu0 }
 0x177   :  { %v2842_v10 = vadd.f32 %v2841_v9, %v2840_v8  ;;  %v2843_v11 = vpop.f32.mrb[18].mxu0  ;;  %v2862_v34 = vpop.f32.mrb[16].mxu1 }
 0x178   :  { %v2844_v12 = vpop.f32.mrb[19].mxu0  ;;  %v2863_v13 = vpop.f32.mrb[17].mxu1 }
 0x179   :  { %v2177_v14 = vadd.f32 %v2842_v10, %v2137_v7  ;;  %v2864_v15 = vadd.f32 %v2863_v13, %v2862_v34  ;;  %v2865_v16 = vpop.f32.mrb[18].mxu1 }
 0x17a   :  { %v2866_v17 = vpop.f32.mrb[19].mxu1 }
 0x17b   :  { %v2217_v18 = vadd.f32 %v2864_v15, %v2177_v14 }
 0x195   :  { %v2884_v19 = vpop.f32.mrb[20].mxu0 }
 0x196   :  { %v2885_v20 = vpop.f32.mrb[21].mxu0 }
 0x197   :  { %v2886_v21 = vadd.f32 %v2885_v20, %v2884_v19  ;;  %v2887_v22 = vpop.f32.mrb[22].mxu0  ;;  %v2906_v23 = vpop.f32.mrb[20].mxu1 }
 0x198   :  { %v2888_v24 = vpop.f32.mrb[23].mxu0  ;;  %v2907_v25 = vpop.f32.mrb[21].mxu1 }
 0x199   :  { %v2257_v26 = vadd.f32 %v2886_v21, %v2217_v18  ;;  %v2908_v27 = vadd.f32 %v2907_v25, %v2906_v23  ;;  %v2909_v28 = vpop.f32.mrb[22].mxu1 }
 0x19a   :  { %v2910_v29 = vpop.f32.mrb[23].mxu1 }
 0x19b   :  { %v2297_v30 = vadd.f32 %v2908_v27, %v2257_v26 }
 0x1b5   :  { %v2336_v31 = vpop.f32.mrb[24].mxu0 }
 0x1b6   :  { %v2337_v32 = vadd.f32 %v2336_v31, %v2297_v30  ;;  %v2956_v33 = vpop.f32.mrb[25].mxu0 }
 0x1b7   :  { %v2339_v35 = vpop.f32.mrb[26].mxu0 }
 0x1b8   :  { %3224 = vtanh.f32 %v2337_v32  ;;  %v2957_v36 = vpop.f32.mrb[27].mxu0 }
 0x1c2   :  { %v3225_v37 = vpop.eup %3224 }
 0x1c3   :  { %2991 = vmatmul.mubr.f32.vlgmr.msra.gmra.mrb[24].mxu1 %v3225_v37 }
 0x296   :  { %v2432_v39 = vpop.f32.mrb[24].mxu1 }
 0x297   :  { %v2433_v40 = vadd.f32 %v2647_v38, %v2432_v39  ;;  %v2992_v41 = vpop.f32.mrb[25].mxu1 }
 0x299   :  { %v2436_v42 = vmul.f32 0.5, %v2433_v40 }
 0x29b   :  { %3226 = vtanh.f32 %v2436_v42 }
 0x2a5   :  { %v3227_v43 = vpop.eup %3226 }
 0x2a6   :  { %v2438_v44 = vmul.f32 0.5, %v3227_v43 }
 0x2a8   :  { %v2439_v45 = vadd.f32 0.5, %v2438_v44 }
 0x2aa   :  { %2440 = vst [vmem:[%s3972_s5] sm:$0x3] %v2439_v45 }

</bundles_post_ra>
